<compile_context>
chip_gen: v7x
topology: tpu7x:2x2x1
jax: 0.10.0
libtpu: 0.0.40
codegen_flags: <defaults>
</compile_context>

<pallas_src>
import jax
import jax.numpy as jnp
import numpy as np
from jax.experimental import pallas as pl
from jax.experimental.pallas import tpu as pltpu


def _round_up(x, m):
    return ((x + m - 1) // m) * m


def _device_kind():
    try:
        return jax.devices()[0].device_kind.lower()
    except Exception:
        return ""


def _default_hid_dtype():
    # bf16 EUP/VPU exists on v6e/v7x; on v5e and older it only adds cast work.
    kind = _device_kind()
    if any(t in kind for t in ("v6", "v7", "7x")):
        return jnp.bfloat16
    return jnp.float32


def _vmem_capacity_bytes():
    kind = _device_kind()
    if any(t in kind for t in ("v7", "7x")):
        return 64 << 20            # v7x: 64 MiB per TensorCore
    return 128 << 20               # v5e / v6e (and older)


def _make_kernel(hid_dtype, approx_recip):
    def kernel(q_ref, kp_ref, v_ref, wq_ref, ww_ref, out_ref, attn_ref):
        # Block views (batch axis squeezed by the BlockSpecs):
        #   q_ref    (tq_tile, dq)    f32   query rows for this grid step
        #   kp_ref   (A, Tk)          hid   key @ Wk^T + bias, pre-transposed
        #   v_ref    (Tk, dv_pad)     f32
        #   wq_ref   (dq, A)          f32
        #   ww_ref   (A, 1)           f32   scoring weight of Linear(A, 1)
        #   out_ref  (tq_tile, dv_pad)
        #   attn_ref (tq_tile, Tk)
        A, Tk = kp_ref.shape

        # Query projection on the MXU (the key projection is hoisted to the
        # wrapper and reused by every query tile of the batch).
        qp = jnp.dot(q_ref[...], wq_ref[...],
                     preferred_element_type=jnp.float32)           # (tq, A)
        qh = qp.astype(hid_dtype)
        kh = kp_ref[...]                                           # (A, Tk)

        # Lane-dense 3-D hot region: (tq, A, Tk) with the key axis on lanes,
        # so the EUP tanh and VPU add use full vregs even when A < 128.
        hid = jnp.tanh(qh[:, :, None] + kh[None, :, :])

        # Contract over A (sublane axis) with the scoring weights.
        # (The scalar scoring bias of the original module is omitted: it adds
        #  the same constant to every logit and cancels in the softmax.)
        wwb = jnp.broadcast_to(ww_ref[...], (A, Tk))               # (A, Tk) f32
        logits = jnp.sum(hid.astype(jnp.float32) * wwb[None, :, :], axis=1)

        # Row-wise softmax over the keys (exact, in registers -- no scratch).
        m = jnp.max(logits, axis=-1, keepdims=True)
        e = jnp.exp(logits - m)
        denom = jnp.sum(e, axis=-1, keepdims=True)
        weights = e * pl.reciprocal(denom, approx=approx_recip)

        attn_ref[...] = weights.astype(attn_ref.dtype)
        out_ref[...] = jnp.dot(weights, v_ref[...],
                               preferred_element_type=jnp.float32
                               ).astype(out_ref.dtype)

    return kernel


def additive_attention(query, key, value, wq_t, wk_t, bias, w_weight, w_bias,
                       *, hid_dtype=None):
    """Forward pass of AdditiveAttention.

    query:(B,Tq,dq) key:(B,Tk,dk) value:(B,Tk,dv)
    wq_t:(dq,A) wk_t:(dk,A) bias:(A,) w_weight:(A,) w_bias: scalar.

    hid_dtype: dtype of the broadcast-add + tanh hot region.  None -> bfloat16
    on v6e/v7x (bf16 EUP/VPU), float32 otherwise / for tight tolerances.

    Note: w_bias is intentionally unused -- a constant added uniformly to every
    logit cancels exactly in the softmax, so neither output depends on it.
    """
    B, Tq, dq = query.shape
    _, Tk, dk = key.shape
    _, _, dv = value.shape
    A = wq_t.shape[1]

    if hid_dtype is None:
        hid_dtype = _default_hid_dtype()
    hid_dtype = jnp.dtype(hid_dtype)
    hid_bytes = hid_dtype.itemsize
    approx_recip = bool(hid_dtype != jnp.dtype(jnp.float32))

    vmem_cap = _vmem_capacity_bytes()
    hid_budget = (2 << 20) if vmem_cap <= (64 << 20) else (4 << 20)

    # attn_dim / key-length aware query tile: bound the (tq_tile, A, Tk) tanh
    # intermediate to hid_budget (multiple of 8 sublanes, capped at 256).
    cap = max(8, (hid_budget // (A * Tk * hid_bytes)) // 8 * 8)
    tq_tile = int(min(256, cap, _round_up(Tq, 8)))

    # Pad the query axis to a multiple of the tile (padded rows are independent
    # through the row-wise softmax; sliced off below).
    Tq_pad = _round_up(Tq, tq_tile)
    if Tq_pad != Tq:
        query = jnp.pad(query, ((0, 0), (0, Tq_pad - Tq), (0, 0)))

    # Lane-dense context output: pad dv up to a multiple of 128 (unmasked vst),
    # slice back afterwards (zero-padded value columns produce zeros).
    dv_pad = _round_up(dv, 128)
    if dv_pad != dv:
        value = jnp.pad(value, ((0, 0), (0, 0), (0, dv_pad - dv)))

    # Key projection (+ additive bias), computed once per batch element in the
    # wrapper (not per query tile) and passed pre-transposed so A sits on
    # sublanes and the key axis on lanes inside the kernel.
    kp = (key.astype(jnp.float32) @ wk_t.astype(jnp.float32)
          + bias.astype(jnp.float32)[None, None, :])                # (B, Tk, A)
    kp_t = jnp.swapaxes(kp, 1, 2).astype(hid_dtype)                 # (B, A, Tk)

    wq_f = wq_t.astype(jnp.float32)
    ww2 = jnp.reshape(w_weight, (A, 1)).astype(jnp.float32)

    kernel = _make_kernel(hid_dtype, approx_recip)

    # VMEM bill (per grid step, counting double buffers conservatively) ->
    # vmem limit with headroom, capped per chip generation.
    f32b = 4
    bill = (
        2 * tq_tile * dq * f32b                  # query block
        + 2 * A * Tk * hid_bytes                 # key projection block
        + 2 * Tk * dv_pad * f32b                 # value block
        + dq * A * f32b + A * f32b               # weights
        + 2 * tq_tile * dv_pad * f32b            # context output block
        + 2 * tq_tile * Tk * f32b                # attention output block
        + tq_tile * A * Tk * (hid_bytes + f32b)  # tanh slab + f32 product
        + A * Tk * f32b                          # broadcast scoring weights
        + 4 * tq_tile * Tk * f32b                # softmax temporaries
    )
    vmem_limit = int(min(max(bill + (8 << 20), 32 << 20), int(0.75 * vmem_cap)))

    grid = (B, Tq_pad // tq_tile)
    out_shapes = (
        jax.ShapeDtypeStruct((B, Tq_pad, dv_pad), query.dtype),
        jax.ShapeDtypeStruct((B, Tq_pad, Tk), query.dtype),
    )

    def _invoke(single_buffer):
        def resident_spec(shape, index_map):
            # Blocks whose index never changes within a batch (or at all):
            # single-buffer them to save VMEM.
            if single_buffer:
                return pl.BlockSpec(shape, index_map,
                                    pipeline_mode=pl.Buffered(1))
            return pl.BlockSpec(shape, index_map)

        grid_spec = pltpu.PrefetchScalarGridSpec(
            num_scalar_prefetch=0,
            grid=grid,
            in_specs=[
                pl.BlockSpec((None, tq_tile, dq), lambda b, i: (b, i, 0)),
                resident_spec((None, A, Tk), lambda b, i: (b, 0, 0)),
                resident_spec((None, Tk, dv_pad), lambda b, i: (b, 0, 0)),
                resident_spec((dq, A), lambda b, i: (0, 0)),
                resident_spec((A, 1), lambda b, i: (0, 0)),
            ],
            out_specs=[
                pl.BlockSpec((None, tq_tile, dv_pad), lambda b, i: (b, i, 0)),
                pl.BlockSpec((None, tq_tile, Tk), lambda b, i: (b, i, 0)),
            ],
        )
        return pl.pallas_call(
            kernel,
            out_shape=out_shapes,
            grid_spec=grid_spec,
            compiler_params=pltpu.CompilerParams(
                dimension_semantics=("parallel", "parallel"),
                vmem_limit_bytes=vmem_limit,
            ),
        )(query, kp_t, value, wq_f, ww2)

    try:
        out, attn = _invoke(True)
    except Exception:
        # pl.Buffered(1) unsupported by this Pallas version: fall back to the
        # default double-buffered pipeline (correctness unaffected).
        out, attn = _invoke(False)

    return out[:, :Tq, :dv], attn[:, :Tq, :]


def reference(query, key, value, wq_t, wk_t, bias, w_weight, w_bias):
    qp = query @ wq_t
    kp = key @ wk_t
    hid = jnp.tanh(qp[..., :, None, :] + kp[..., None, :, :] + bias)
    logits = jnp.sum(hid * w_weight, axis=-1) + w_bias
    weights = jax.nn.softmax(logits, axis=-1)
    out = weights @ value
    return out, weights


def _make_inputs(seed, B, Tq, Tk, q_dim, k_dim, attn_dim, v_dim):
    key0 = jax.random.PRNGKey(seed)
    ks = jax.random.split(key0, 8)
    query = jax.random.normal(ks[0], (B, Tq, q_dim), dtype=jnp.float32)
    key_t = jax.random.normal(ks[1], (B, Tk, k_dim), dtype=jnp.float32)
    value = jax.random.normal(ks[2], (B, Tk, v_dim), dtype=jnp.float32)
    # Deterministic parameter init (mimics nn.Linear default uniform ranges).
    wq = jax.random.uniform(ks[3], (attn_dim, q_dim), jnp.float32,
                            -1.0 / np.sqrt(q_dim), 1.0 / np.sqrt(q_dim))
    wk = jax.random.uniform(ks[4], (attn_dim, k_dim), jnp.float32,
                            -1.0 / np.sqrt(k_dim), 1.0 / np.sqrt(k_dim))
    bias = jax.random.uniform(ks[5], (attn_dim,), jnp.float32, -0.1, 0.1)
    w_weight = jax.random.uniform(ks[6], (attn_dim,), jnp.float32,
                                  -1.0 / np.sqrt(attn_dim), 1.0 / np.sqrt(attn_dim))
    w_bias = jax.random.uniform(ks[7], (), jnp.float32,
                                -1.0 / np.sqrt(attn_dim), 1.0 / np.sqrt(attn_dim))
    return query, key_t, value, wq.T, wk.T, bias, w_weight, w_bias


def _check(args, hid_dtype, rtol, atol):
    out, attn = additive_attention(*args, hid_dtype=hid_dtype)
    jax.block_until_ready((out, attn))
    ref_out, ref_attn = reference(*args)
    np.testing.assert_allclose(np.asarray(out), np.asarray(ref_out),
                               rtol=rtol, atol=atol)
    np.testing.assert_allclose(np.asarray(attn), np.asarray(ref_attn),
                               rtol=rtol, atol=atol)


if __name__ == "__main__":
    # Test 1: small shapes (Tk < 128 -> masked lanes, tq_tile = 8).
    args1 = _make_inputs(0, B=2, Tq=8, Tk=8, q_dim=32, k_dim=32,
                         attn_dim=32, v_dim=16)
    _check(args1, jnp.float32, rtol=1e-5, atol=1e-5)
    # bf16 tanh region (v6e/v7x fast path) -- looser tolerance.
    _check(args1, jnp.bfloat16, rtol=5e-2, atol=5e-2)

    # Test 2: lane-dense key axis (Tk = 384), dv padded to 128, unequal q/k
    # dims, tq_tile limited by the attn_dim-aware budget.
    args2 = _make_inputs(1, B=2, Tq=16, Tk=384, q_dim=40, k_dim=48,
                         attn_dim=64, v_dim=24)
    _check(args2, jnp.float32, rtol=1e-4, atol=1e-5)

    # Test 3: multiple query tiles per batch, Tq padding (200 -> multiple of
    # the selected tile), larger attn_dim so the budget drives the tile size.
    args3 = _make_inputs(2, B=2, Tq=200, Tk=512, q_dim=64, k_dim=96,
                         attn_dim=128, v_dim=32)
    _check(args3, jnp.float32, rtol=5e-4, atol=1e-4)

    # Test 4: chip-default hid dtype (bf16 on v6e/v7x, f32 otherwise).
    _check(args2, None, rtol=5e-2, atol=5e-2)

    print("KERNEL_OK")
</pallas_src>

<mosaic_0001>
module attributes {stable_mosaic.version = 11 : i64} {
  func.func @kernel(%arg0: i32, %arg1: i32, %arg2: memref<1x8x32xf32, #tpu.memory_space<vmem>>, %arg3: memref<1x32x8xf32, #tpu.memory_space<vmem>>, %arg4: memref<1x8x128xf32, #tpu.memory_space<vmem>>, %arg5: memref<32x32xf32, #tpu.memory_space<vmem>>, %arg6: memref<32x1xf32, #tpu.memory_space<vmem>>, %arg7: memref<1x8x128xf32, #tpu.memory_space<vmem>>, %arg8: memref<1x8x8xf32, #tpu.memory_space<vmem>>) attributes {dimension_semantics = [#tpu.dimension_semantics<parallel>, #tpu.dimension_semantics<parallel>], iteration_bounds = array<i64: 2, 1>, scalar_prefetch = 0 : i64, scratch_operands = 0 : i64, tpu.core_type = #tpu.core_type<tc>, window_params = [{transform_indices = @transform_0, window_bounds = array<i64: 1, 8, 32>}, {pipeline_mode = #tpu.pipeline_mode<synchronous>, transform_indices = @transform_1, window_bounds = array<i64: 1, 32, 8>}, {pipeline_mode = #tpu.pipeline_mode<synchronous>, transform_indices = @transform_2, window_bounds = array<i64: 1, 8, 128>}, {pipeline_mode = #tpu.pipeline_mode<synchronous>, transform_indices = @transform_3, window_bounds = array<i64: 32, 32>}, {pipeline_mode = #tpu.pipeline_mode<synchronous>, transform_indices = @transform_4, window_bounds = array<i64: 32, 1>}, {transform_indices = @transform_5, window_bounds = array<i64: 1, 8, 128>}, {transform_indices = @transform_6, window_bounds = array<i64: 1, 8, 8>}]} {
    %c0 = arith.constant 0 : index
    %c0_0 = arith.constant 0 : index
    %c0_1 = arith.constant 0 : index
    %0 = vector.load %arg2[%c0, %c0_0, %c0_1] : memref<1x8x32xf32, #tpu.memory_space<vmem>>, vector<1x8x32xf32>
    %1 = vector.shape_cast %0 : vector<1x8x32xf32> to vector<8x32xf32>
    %c0_2 = arith.constant 0 : index
    %c0_3 = arith.constant 0 : index
    %2 = vector.load %arg5[%c0_2, %c0_3] : memref<32x32xf32, #tpu.memory_space<vmem>>, vector<32x32xf32>
    %cst = arith.constant dense<0.000000e+00> : vector<8x32xf32>
    %3 = tpu.matmul %1, %2, %cst {dimension_numbers = #tpu.dot_dimension_numbers<[1], [0], [0], [1], [0, 0, 1, 1], [], []>} : vector<8x32xf32>, vector<32x32xf32>, vector<8x32xf32> -> vector<8x32xf32>
    %c0_4 = arith.constant 0 : index
    %c0_5 = arith.constant 0 : index
    %c0_6 = arith.constant 0 : index
    %4 = vector.load %arg3[%c0_4, %c0_5, %c0_6] : memref<1x32x8xf32, #tpu.memory_space<vmem>>, vector<1x32x8xf32>
    %5 = vector.shape_cast %4 : vector<1x32x8xf32> to vector<32x8xf32>
    %6 = vector.shape_cast %3 : vector<8x32xf32> to vector<8x32x1xf32>
    %7 = vector.shape_cast %5 : vector<32x8xf32> to vector<1x32x8xf32>
    %8 = vector.broadcast %6 : vector<8x32x1xf32> to vector<8x32x8xf32>
    %9 = vector.broadcast %7 : vector<1x32x8xf32> to vector<8x32x8xf32>
    %10 = arith.addf %8, %9 : vector<8x32x8xf32>
    %11 = math.tanh %10 : vector<8x32x8xf32>
    %c0_7 = arith.constant 0 : index
    %c0_8 = arith.constant 0 : index
    %12 = vector.load %arg6[%c0_7, %c0_8] : memref<32x1xf32, #tpu.memory_space<vmem>>, vector<32x1xf32>
    %13 = vector.shape_cast %12 : vector<32x1xf32> to vector<32x1xf32>
    %14 = vector.broadcast %13 : vector<32x1xf32> to vector<32x8xf32>
    %15 = vector.shape_cast %14 : vector<32x8xf32> to vector<1x32x8xf32>
    %16 = vector.broadcast %15 : vector<1x32x8xf32> to vector<8x32x8xf32>
    %17 = arith.mulf %11, %16 : vector<8x32x8xf32>
    %cst_9 = arith.constant dense<0.000000e+00> : vector<8x8xf32>
    %18 = vector.multi_reduction <add>, %17, %cst_9 [1] : vector<8x32x8xf32> to vector<8x8xf32>
    %cst_10 = arith.constant dense<0xFF800000> : vector<8xf32>
    %19 = vector.multi_reduction <maximumf>, %18, %cst_10 [1] : vector<8x8xf32> to vector<8xf32>
    %20 = vector.shape_cast %19 : vector<8xf32> to vector<8x1xf32>
    %21 = vector.broadcast %20 : vector<8x1xf32> to vector<8x8xf32>
    %22 = arith.subf %18, %21 : vector<8x8xf32>
    %23 = math.exp %22 : vector<8x8xf32>
    %cst_11 = arith.constant dense<0.000000e+00> : vector<8xf32>
    %24 = vector.multi_reduction <add>, %23, %cst_11 [1] : vector<8x8xf32> to vector<8xf32>
    %25 = vector.shape_cast %24 : vector<8xf32> to vector<8x1xf32>
    %26 = tpu.reciprocal %25 : vector<8x1xf32> -> vector<8x1xf32>
    %27 = vector.broadcast %26 : vector<8x1xf32> to vector<8x8xf32>
    %28 = arith.mulf %23, %27 : vector<8x8xf32>
    %c0_12 = arith.constant 0 : index
    %c0_13 = arith.constant 0 : index
    %c0_14 = arith.constant 0 : index
    %29 = vector.load %arg8[%c0_12, %c0_13, %c0_14] : memref<1x8x8xf32, #tpu.memory_space<vmem>>, vector<1x8x8xf32>
    %30 = vector.shape_cast %29 : vector<1x8x8xf32> to vector<8x8xf32>
    %31 = vector.shape_cast %28 : vector<8x8xf32> to vector<1x8x8xf32>
    tpu.vector_store %arg8[%c0_12, %c0_13, %c0_14], %31 {strides = array<i32>} : memref<1x8x8xf32, #tpu.memory_space<vmem>>, vector<1x8x8xf32>,
    %c0_15 = arith.constant 0 : index
    %c0_16 = arith.constant 0 : index
    %c0_17 = arith.constant 0 : index
    %32 = vector.load %arg4[%c0_15, %c0_16, %c0_17] : memref<1x8x128xf32, #tpu.memory_space<vmem>>, vector<1x8x128xf32>
    %33 = vector.shape_cast %32 : vector<1x8x128xf32> to vector<8x128xf32>
    %cst_18 = arith.constant dense<0.000000e+00> : vector<8x128xf32>
    %34 = tpu.matmul %28, %33, %cst_18 {dimension_numbers = #tpu.dot_dimension_numbers<[1], [0], [0], [1], [0, 0, 1, 1], [], []>} : vector<8x8xf32>, vector<8x128xf32>, vector<8x128xf32> -> vector<8x128xf32>
    %c0_19 = arith.constant 0 : index
    %c0_20 = arith.constant 0 : index
    %c0_21 = arith.constant 0 : index
    %35 = vector.load %arg7[%c0_19, %c0_20, %c0_21] : memref<1x8x128xf32, #tpu.memory_space<vmem>>, vector<1x8x128xf32>
    %36 = vector.shape_cast %35 : vector<1x8x128xf32> to vector<8x128xf32>
    %37 = vector.shape_cast %34 : vector<8x128xf32> to vector<1x8x128xf32>
    tpu.vector_store %arg7[%c0_19, %c0_20, %c0_21], %37 {strides = array<i32>} : memref<1x8x128xf32, #tpu.memory_space<vmem>>, vector<1x8x128xf32>,
    return
  }
  func.func @transform_0(%arg0: i32, %arg1: i32) -> (i32, i32, i32) {
    %c0_i32 = arith.constant 0 : i32
    %c0_i32_0 = arith.constant 0 : i32
    return %arg0, %arg1, %c0_i32 : i32, i32, i32
  }
  func.func @transform_1(%arg0: i32, %arg1: i32) -> (i32, i32, i32) {
    %c0_i32 = arith.constant 0 : i32
    %c0_i32_0 = arith.constant 0 : i32
    %c0_i32_1 = arith.constant 0 : i32
    return %arg0, %c0_i32, %c0_i32_0 : i32, i32, i32
  }
  func.func @transform_2(%arg0: i32, %arg1: i32) -> (i32, i32, i32) {
    %c0_i32 = arith.constant 0 : i32
    %c0_i32_0 = arith.constant 0 : i32
    %c0_i32_1 = arith.constant 0 : i32
    return %arg0, %c0_i32, %c0_i32_0 : i32, i32, i32
  }
  func.func @transform_3(%arg0: i32, %arg1: i32) -> (i32, i32) {
    %c0_i32 = arith.constant 0 : i32
    %c0_i32_0 = arith.constant 0 : i32
    %c0_i32_1 = arith.constant 0 : i32
    return %c0_i32, %c0_i32_0 : i32, i32
  }
  func.func @transform_4(%arg0: i32, %arg1: i32) -> (i32, i32) {
    %c0_i32 = arith.constant 0 : i32
    %c0_i32_0 = arith.constant 0 : i32
    %c0_i32_1 = arith.constant 0 : i32
    return %c0_i32, %c0_i32_0 : i32, i32
  }
  func.func @transform_5(%arg0: i32, %arg1: i32) -> (i32, i32, i32) {
    %c0_i32 = arith.constant 0 : i32
    %c0_i32_0 = arith.constant 0 : i32
    return %arg0, %arg1, %c0_i32 : i32, i32, i32
  }
  func.func @transform_6(%arg0: i32, %arg1: i32) -> (i32, i32, i32) {
    %c0_i32 = arith.constant 0 : i32
    %c0_i32_0 = arith.constant 0 : i32
    return %arg0, %arg1, %c0_i32 : i32, i32, i32
  }
}

module attributes {stable_mosaic.version = 11 : i64} {
  func.func @kernel(%arg0: i32, %arg1: i32, %arg2: memref<1x8x32xf32, #tpu.memory_space<vmem>>, %arg3: memref<1x32x8xf32, #tpu.memory_space<vmem>>, %arg4: memref<1x8x128xf32, #tpu.memory_space<vmem>>, %arg5: memref<32x32xf32, #tpu.memory_space<vmem>>, %arg6: memref<32x1xf32, #tpu.memory_space<vmem>>, %arg7: memref<1x8x128xf32, #tpu.memory_space<vmem>>, %arg8: memref<1x8x8xf32, #tpu.memory_space<vmem>>) attributes {dimension_semantics = [#tpu.dimension_semantics<parallel>, #tpu.dimension_semantics<parallel>], iteration_bounds = array<i64: 2, 1>, scalar_prefetch = 0 : i64, scratch_operands = 0 : i64, tpu.core_type = #tpu.core_type<tc>, window_params = [{transform_indices = @transform_0, window_bounds = array<i64: 1, 8, 32>}, {transform_indices = @transform_1, window_bounds = array<i64: 1, 32, 8>}, {transform_indices = @transform_2, window_bounds = array<i64: 1, 8, 128>}, {pipeline_mode = #tpu.pipeline_mode<synchronous>, transform_indices = @transform_3, window_bounds = array<i64: 32, 32>}, {pipeline_mode = #tpu.pipeline_mode<synchronous>, transform_indices = @transform_4, window_bounds = array<i64: 32, 1>}, {transform_indices = @transform_5, window_bounds = array<i64: 1, 8, 128>}, {transform_indices = @transform_6, window_bounds = array<i64: 1, 8, 8>}]} {
    %c0 = arith.constant 0 : index
    %c0_0 = arith.constant 0 : index
    %c0_1 = arith.constant 0 : index
    %0 = vector.load %arg2[%c0, %c0_0, %c0_1] : memref<1x8x32xf32, #tpu.memory_space<vmem>>, vector<1x8x32xf32>
    %1 = vector.shape_cast %0 : vector<1x8x32xf32> to vector<8x32xf32>
    %c0_2 = arith.constant 0 : index
    %c0_3 = arith.constant 0 : index
    %2 = vector.load %arg5[%c0_2, %c0_3] : memref<32x32xf32, #tpu.memory_space<vmem>>, vector<32x32xf32>
    %cst = arith.constant dense<0.000000e+00> : vector<8x32xf32>
    %3 = tpu.matmul %1, %2, %cst {dimension_numbers = #tpu.dot_dimension_numbers<[1], [0], [0], [1], [0, 0, 1, 1], [], []>} : vector<8x32xf32>, vector<32x32xf32>, vector<8x32xf32> -> vector<8x32xf32>
    %c0_4 = arith.constant 0 : index
    %c0_5 = arith.constant 0 : index
    %c0_6 = arith.constant 0 : index
    %4 = vector.load %arg3[%c0_4, %c0_5, %c0_6] : memref<1x32x8xf32, #tpu.memory_space<vmem>>, vector<1x32x8xf32>
    %5 = vector.shape_cast %4 : vector<1x32x8xf32> to vector<32x8xf32>
    %6 = vector.shape_cast %3 : vector<8x32xf32> to vector<8x32x1xf32>
    %7 = vector.shape_cast %5 : vector<32x8xf32> to vector<1x32x8xf32>
    %8 = vector.broadcast %6 : vector<8x32x1xf32> to vector<8x32x8xf32>
    %9 = vector.broadcast %7 : vector<1x32x8xf32> to vector<8x32x8xf32>
    %10 = arith.addf %8, %9 : vector<8x32x8xf32>
    %11 = math.tanh %10 : vector<8x32x8xf32>
    %c0_7 = arith.constant 0 : index
    %c0_8 = arith.constant 0 : index
    %12 = vector.load %arg6[%c0_7, %c0_8] : memref<32x1xf32, #tpu.memory_space<vmem>>, vector<32x1xf32>
    %13 = vector.shape_cast %12 : vector<32x1xf32> to vector<32x1xf32>
    %14 = vector.broadcast %13 : vector<32x1xf32> to vector<32x8xf32>
    %15 = vector.shape_cast %14 : vector<32x8xf32> to vector<1x32x8xf32>
    %16 = vector.broadcast %15 : vector<1x32x8xf32> to vector<8x32x8xf32>
    %17 = arith.mulf %11, %16 : vector<8x32x8xf32>
    %cst_9 = arith.constant dense<0.000000e+00> : vector<8x8xf32>
    %18 = vector.multi_reduction <add>, %17, %cst_9 [1] : vector<8x32x8xf32> to vector<8x8xf32>
    %cst_10 = arith.constant dense<0xFF800000> : vector<8xf32>
    %19 = vector.multi_reduction <maximumf>, %18, %cst_10 [1] : vector<8x8xf32> to vector<8xf32>
    %20 = vector.shape_cast %19 : vector<8xf32> to vector<8x1xf32>
    %21 = vector.broadcast %20 : vector<8x1xf32> to vector<8x8xf32>
    %22 = arith.subf %18, %21 : vector<8x8xf32>
    %23 = math.exp %22 : vector<8x8xf32>
    %cst_11 = arith.constant dense<0.000000e+00> : vector<8xf32>
    %24 = vector.multi_reduction <add>, %23, %cst_11 [1] : vector<8x8xf32> to vector<8xf32>
    %25 = vector.shape_cast %24 : vector<8xf32> to vector<8x1xf32>
    %26 = tpu.reciprocal %25 : vector<8x1xf32> -> vector<8x1xf32>
    %27 = vector.broadcast %26 : vector<8x1xf32> to vector<8x8xf32>
    %28 = arith.mulf %23, %27 : vector<8x8xf32>
    %c0_12 = arith.constant 0 : index
    %c0_13 = arith.constant 0 : index
    %c0_14 = arith.constant 0 : index
    %29 = vector.load %arg8[%c0_12, %c0_13, %c0_14] : memref<1x8x8xf32, #tpu.memory_space<vmem>>, vector<1x8x8xf32>
    %30 = vector.shape_cast %29 : vector<1x8x8xf32> to vector<8x8xf32>
    %31 = vector.shape_cast %28 : vector<8x8xf32> to vector<1x8x8xf32>
    tpu.vector_store %arg8[%c0_12, %c0_13, %c0_14], %31 {strides = array<i32>} : memref<1x8x8xf32, #tpu.memory_space<vmem>>, vector<1x8x8xf32>,
    %c0_15 = arith.constant 0 : index
    %c0_16 = arith.constant 0 : index
    %c0_17 = arith.constant 0 : index
    %32 = vector.load %arg4[%c0_15, %c0_16, %c0_17] : memref<1x8x128xf32, #tpu.memory_space<vmem>>, vector<1x8x128xf32>
    %33 = vector.shape_cast %32 : vector<1x8x128xf32> to vector<8x128xf32>
    %cst_18 = arith.constant dense<0.000000e+00> : vector<8x128xf32>
    %34 = tpu.matmul %28, %33, %cst_18 {dimension_numbers = #tpu.dot_dimension_numbers<[1], [0], [0], [1], [0, 0, 1, 1], [], []>} : vector<8x8xf32>, vector<8x128xf32>, vector<8x128xf32> -> vector<8x128xf32>
    %c0_19 = arith.constant 0 : index
    %c0_20 = arith.constant 0 : index
    %c0_21 = arith.constant 0 : index
    %35 = vector.load %arg7[%c0_19, %c0_20, %c0_21] : memref<1x8x128xf32, #tpu.memory_space<vmem>>, vector<1x8x128xf32>
    %36 = vector.shape_cast %35 : vector<1x8x128xf32> to vector<8x128xf32>
    %37 = vector.shape_cast %34 : vector<8x128xf32> to vector<1x8x128xf32>
    tpu.vector_store %arg7[%c0_19, %c0_20, %c0_21], %37 {strides = array<i32>} : memref<1x8x128xf32, #tpu.memory_space<vmem>>, vector<1x8x128xf32>,
    return
  }
  func.func @transform_0(%arg0: i32, %arg1: i32) -> (i32, i32, i32) {
    %c0_i32 = arith.constant 0 : i32
    %c0_i32_0 = arith.constant 0 : i32
    return %arg0, %arg1, %c0_i32 : i32, i32, i32
  }
  func.func @transform_1(%arg0: i32, %arg1: i32) -> (i32, i32, i32) {
    %c0_i32 = arith.constant 0 : i32
    %c0_i32_0 = arith.constant 0 : i32
    %c0_i32_1 = arith.constant 0 : i32
    return %arg0, %c0_i32, %c0_i32_0 : i32, i32, i32
  }
  func.func @transform_2(%arg0: i32, %arg1: i32) -> (i32, i32, i32) {
    %c0_i32 = arith.constant 0 : i32
    %c0_i32_0 = arith.constant 0 : i32
    %c0_i32_1 = arith.constant 0 : i32
    return %arg0, %c0_i32, %c0_i32_0 : i32, i32, i32
  }
  func.func @transform_3(%arg0: i32, %arg1: i32) -> (i32, i32) {
    %c0_i32 = arith.constant 0 : i32
    %c0_i32_0 = arith.constant 0 : i32
    %c0_i32_1 = arith.constant 0 : i32
    return %c0_i32, %c0_i32_0 : i32, i32
  }
  func.func @transform_4(%arg0: i32, %arg1: i32) -> (i32, i32) {
    %c0_i32 = arith.constant 0 : i32
    %c0_i32_0 = arith.constant 0 : i32
    %c0_i32_1 = arith.constant 0 : i32
    return %c0_i32, %c0_i32_0 : i32, i32
  }
  func.func @transform_5(%arg0: i32, %arg1: i32) -> (i32, i32, i32) {
    %c0_i32 = arith.constant 0 : i32
    %c0_i32_0 = arith.constant 0 : i32
    return %arg0, %arg1, %c0_i32 : i32, i32, i32
  }
  func.func @transform_6(%arg0: i32, %arg1: i32) -> (i32, i32, i32) {
    %c0_i32 = arith.constant 0 : i32
    %c0_i32_0 = arith.constant 0 : i32
    return %arg0, %arg1, %c0_i32 : i32, i32, i32
  }
}

</mosaic_0001>

<bundles_post_ra>
// kernel: tpu_custom_call.1
= control target key start
LH: loop header
LB: loop body
LE: loop exit
PB: predicated region body
PF: predicated region fallthrough
CT: control target
= control target key end

     0   :  { %12 = vsyncpa [#allocation3], 0  ;;  %s1846_s0 = inlined_call_operand.vmem [shape: f32[2,8,32], index: 0, kind: input, shape index: {}]   ;;  %s1847_s1 = inlined_call_operand.vmem [shape: f32[2,32,8], index: 1, kind: input, shape index: {}]   ;;  %s1848_s2 = inlined_call_operand.vmem [shape: f32[2,8,128], index: 2, kind: input, shape index: {}]   ;;  %s1849_s3 = inlined_call_operand.vmem [shape: f32[32,32], index: 3, kind: input, shape index: {}]   ;;  %s1850_s4 = inlined_call_operand.vmem [shape: f32[32,1], index: 4, kind: input, shape index: {}]   ;;  %s1851_s5 = inlined_call_operand.hbm [shape: f32[2,8,128], index: 5, kind: output, shape index: {0}]   ;;  %s1852_s6 = inlined_call_operand.hbm [shape: f32[2,8,8], index: 6, kind: output, shape index: {1}]  }
   0x1   :  { %14 = vsyncpa [#allocation3 + $0x1], 0 }
   0x2   :  { %15 = vsyncpa [#allocation5], 0 }
   0x3   :  { %17 = vsyncpa [#allocation5 + $0x1], 0  ;;  %s1515_s21 = smov 0   ;;  %s1517_s22 = smov 0  }
   0x4   :  { %s1519_s23 = smov 0   ;;  %s1521_s24 = smov 0  }
   0x5   :  { %s1523_s25 = smov 0   ;;  %s1525_s26 = smov 0  }
   0x6 LB: > { %s1165_s27 = sadd.s32 4294967295, %s1472_s26   ;;  %s1166_s28 = sadd.s32 4294967294, %s1472_s26   ;;  %s1472_s26 = sphi %s1525_s26, %s23_s26   ;;  %s1468_s25 = sphi %s1523_s25, %s1859_s25   ;;  %s1464_s24 = sphi %s1521_s24, %s1858_s24   ;;  %s1460_s23 = sphi %s1519_s23, %s1857_s23   ;;  %s1456_s22 = sphi %s1517_s22, %s1856_s22   ;;  %s1452_s21 = sphi %s1515_s21, %s1855_s21  }
   0x7   : > { %s35_s29 = sadd.s32 1, %s1468_s25  ;;  %s166_s30 = sadd.s32 1, %s1460_s23 }
   0x8   : > { %p37_p0 = scmp.ge.s32.totalorder %s35_s29, 2  ;;  %p176_p1 = scmp.ne.s32.totalorder %s1460_s23, %s1456_s22 }
   0x9   : > { %p177_p2 = scmp.eq.s32.totalorder %s1165_s27, 1  ;;  %p182_p3 = scmp.ne.s32.totalorder %s1456_s22, %s1452_s21 }
   0xa   : > { %s1861_s29 = smov (%p37_p0, %s35_s29), 0  ;;  %p183_p5 = scmp.eq.s32.totalorder %s1166_s28, 1 }
   0xb   : > { %p1555_p4 = por %p177_p2, %p176_p1  ;;  %s161_s8 = ssub.s32 %s1468_s25, %s1861_s29 }
   0xc   : > { %p1169_p6 = scmp.ge.s32.totalorder %s1472_s26, 1  ;;  %p164_p7 = scmp.eq.s32.totalorder %s161_s8, 0 }
   0xd   : > { %p1562_p8 = por %p183_p5, %p182_p3  ;;  %p260_p9 = scmp.lt.s32.totalorder %s1472_s26, 3 }
   0xe   : > { %s1568_s10 = scalar_select %p164_p7, %s1460_s23, %s166_s30  }
   0xf   : > { %p261_p10 = pnand %p1169_p6, %p260_p9 }
  0x10   : > { %v323_v0 = vld [vmem:[%s1849_s3] sm:$0xff] (!%p261_p10)  ;;  %v324_v1 = vld [vmem:[%s1849_s3 + $0x8] sm:$0xff] (!%p261_p10)  ;;  %v325_v2 = vld [vmem:[%s1849_s3 + $0x10] sm:$0xff] (!%p261_p10)  ;;  %v1474_v3 = vmov (!%p261_p10), 0.0|0.0   ;;  %vm1475_vm0 = vmmov (!%p261_p10), 0   ;;  %v1476_v6 = vmov (!%p261_p10), 0.0   ;;  %v405_v13 = vlaneseq (!%p261_p10) }
  0x11   : > { %264 = sbr.rel (%p261_p10) target bundleno = 1021 (0x3fd), region = 40  ;;  %1208 = vmatprep.subr.bf16.mxu0 (!%p261_p10), %v1474_v3  ;;  %v1209_v4 = vpack.c.bf16 (!%p261_p10), %v324_v1, %v323_v0  ;;  %v326_v5 = vld [vmem:[%s1849_s3 + $0x18] sm:$0xff] (!%p261_p10)  ;;  %1200 = vmatprep.mubr.msk.f32.mxu0 (!%p261_p10), %vm1475_vm0, %v1476_v6  ;;  %p306_p11 = scmp.lt.s32.totalorder (!%p261_p10), %s1464_s24, 1  ;;  %v622_v7 = vld [vmem:[%s1850_s4 + $0x8] sm:$0xff] (!%p261_p10)  ;;  %v1477_v8 = vmov (!%p261_p10), 0   ;;  %v621_v9 = vld [vmem:[%s1850_s4] sm:$0xff] (!%p261_p10) }
  0x12   : > { %1279 = vset.pattern.permute.xlu1 (!%p261_p10), %v1477_v8  ;;  %1278 = vset.pattern.permute.xlu0 (!%p261_p10), %v1477_v8  ;;  %v1212_v10 = vpack.c.bf16 (!%p261_p10), %v326_v5, %v325_v2  ;;  %v623_v11 = vld [vmem:[%s1850_s4 + $0x10] sm:$0xff] (!%p261_p10)  ;;  %vm327_vm1 = vcmask (!%p261_p10), 261120   ;;  %v406_v14 = vshrl.u32 (!%p261_p10), %v405_v13, 7  ;;  %v624_v33 = vld [vmem:[%s1850_s4 + $0x18] sm:$0xff] (!%p261_p10)  ;;  %vm677_vm2 = vcmask (!%p261_p10), 64512   ;;  %s1180_s14 = sshll.u32 (!%p261_p10), %s1464_s24, 7 }
  0x13   : > { %1210 = vmatpush3.bf16.msra.mxu0 (!%p261_p10), %v1209_v4  ;;  %632 = vperm.xlu1 (!%p261_p10), %1279, %v622_v7   ;;  %vm790_vm3 = vcmask (!%p261_p10), 1041409   ;;  %vm792_vm4 = vcmask (!%p261_p10), 1042434   ;;  %vm794_vm5 = vcmask (!%p261_p10), 1043459   ;;  %vm796_vm6 = vcmask (!%p261_p10), 1044484   ;;  %s1771_s17 = scalar_lea.hbm (!%p261_p10), %s1852_s6, %s1180_s14 }
  0x14   : > { %1211 = vmatprep.subr.bf16.mxu0 (!%p261_p10), %v1474_v3  ;;  %627 = vperm.xlu0 (!%p261_p10), %1278, %v621_v9   ;;  %v426_v15 = vsub.s32 (!%p261_p10), 1, %v406_v14  ;;  %v407_v16 = vsub.s32 (!%p261_p10), 0, %v406_v14  ;;  %v445_v21 = vsub.s32 (!%p261_p10), 2, %v406_v14  ;;  %v464_v23 = vsub.s32 (!%p261_p10), 3, %v406_v14 }
  0x15   : > { %1203 = vmatprep.subr.mxu1 (!%p261_p10), %v1476_v6  ;;  %1205 = vmatprep.mubr.msk.f32.mxu1 (!%p261_p10), %vm1475_vm0, %v1476_v6  ;;  %v483_v25 = vsub.s32 (!%p261_p10), 4, %v406_v14  ;;  %v502_v27 = vsub.s32 (!%p261_p10), 5, %v406_v14  ;;  %v521_v29 = vsub.s32 (!%p261_p10), 6, %v406_v14  ;;  %v540_v31 = vsub.s32 (!%p261_p10), 7, %v406_v14 }
  0x16   : > { %vm798_vm7 = vcmask (!%p261_p10), 1045509   ;;  %vm800_vm8 = vcmask (!%p261_p10), 1046534   ;;  %vm802_vm9 = vcmask (!%p261_p10), 1047559  }
  0x17   : > { %1213 = vmatpush3.bf16.msra.mxu0 (!%p261_p10), %v1212_v10  ;;  %637 = vperm.xlu1 (!%p261_p10), %1279, %v623_v11  }
  0x18   : > { %s1591_s30 = scalar_select %p306_p11, %s1464_s24, 1 }
  0x1a   : > { %s1172_s12 = sshll.u32 %s1591_s30, 3  ;;  %s1184_s18 = sshll.u32 %s1591_s30, 5 }
  0x1b   : > { %s312_s15 = scalar_lea.vmem %s1846_s0, %s1172_s12  ;;  %s1616_s27 = scalar_lea.vmem %s1847_s1, %s1184_s18 }
  0x1c   : > { %v322_v12 = vld [vmem:[%s312_s15] sm:$0xff]  ;;  %v1624_v42 = vld [vmem:[%s1616_s27 + $0x8] sm:$0xff]  ;;  %v1631_v51 = vld [vmem:[%s1616_s27 + $0x10] sm:$0xff]  ;;  %s321_s11 = scalar_lea.vmem %s1848_s2, %s1172_s12  ;;  %s1751_s30 = sand.u32 1, %s1456_s22  }
  0x1d   : > { %1201 = vmatmul.mubr.msk.f32.vlgmr.msra.gmra.mrb[0].mxu0 %vm327_vm1, %v322_v12  ;;  %v1619_v37 = vld [vmem:[%s1616_s27] sm:$0xff]  ;;  %s1170_s12 = sshll.u32 %s1751_s30, 3  ;;  %s1003_s19 = scalar_lea.sflag [#allocation5], %s1751_s30 }
  0x1e   : > { %s305_s13 = scalar_lea.vmem [#allocation4], %s1170_s12 }
  0x1f   : > { %s1031_s18 = sshll.u32 %s305_s13, 4  ;;  %s1032_s18 = int_to_ptr.vmem [resolvable:$true] %s1031_s18 }
  0x20   : > { %s1362_s20 = scalar_lea.vmem %s1032_s18, 128 }
  0x21   : > { %p1363_p12 = scmp.ne.s32.totalorder %s1032_s18, %s1362_s20 }
  0x23   : > { %p1364_p13 = pnand %p1363_p12, %p1555_p4 }
  0x25   : > { %p1365_p0 = pneg %p1364_p13 }
  0x92   : > { %v1606_v34 = vpop.permute.xlu1 %632 }
  0x93   : > { %v1611_v36 = vpop.permute.xlu0 %627 }
  0x96   : > { %v1609_v35 = vpop.permute.xlu1 %637 }
  0xf0   : > { %v397_v17 = vpop.f32.mrb[0].mxu0 }
  0xf1   : > { %v1202_v18 = vpop.f32.mrb[1].mxu0  ;;  %v427_v19 = vrot.slane %v397_v17, %v426_v15  ;;  %v408_v20 = vrot.slane %v397_v17, %v407_v16  ;;  %v446_v22 = vrot.slane %v397_v17, %v445_v21  ;;  %v465_v24 = vrot.slane %v397_v17, %v464_v23 }
  0xf2   : > { %v484_v26 = vrot.slane %v397_v17, %v483_v25  ;;  %v503_v28 = vrot.slane %v397_v17, %v502_v27  ;;  %v522_v30 = vrot.slane %v397_v17, %v521_v29  ;;  %v541_v32 = vrot.slane %v397_v17, %v540_v31 }
  0xf3   : > { %429 = vbcast.lane.b32.xlu1 %v427_v19, 256  ;;  %410 = vbcast.lane.b32.xlu0 %v408_v20, 256 }
  0xf7   : > { %433 = vbcast.lane.b32.xlu1 %v427_v19, 264  ;;  %414 = vbcast.lane.b32.xlu0 %v408_v20, 264 }
  0xfb   : > { %452 = vbcast.lane.b32.xlu1 %v446_v22, 264  ;;  %448 = vbcast.lane.b32.xlu0 %v446_v22, 256 }
  0xff   : > { %437 = vbcast.lane.b32.xlu1 %v427_v19, 272  ;;  %418 = vbcast.lane.b32.xlu0 %v408_v20, 272 }
 0x103   : > { %471 = vbcast.lane.b32.xlu1 %v465_v24, 264  ;;  %467 = vbcast.lane.b32.xlu0 %v465_v24, 256 }
 0x107   : > { %486 = vbcast.lane.b32.xlu1 %v484_v26, 256  ;;  %456 = vbcast.lane.b32.xlu0 %v446_v22, 272 }
 0x10b   : > { %422 = vbcast.lane.b32.xlu1 %v408_v20, 280  ;;  %490 = vbcast.lane.b32.xlu0 %v484_v26, 264 }
 0x10f   : > { %475 = vbcast.lane.b32.xlu1 %v465_v24, 272  ;;  %441 = vbcast.lane.b32.xlu0 %v427_v19, 280 }
 0x113   : > { %509 = vbcast.lane.b32.xlu1 %v503_v28, 264  ;;  %505 = vbcast.lane.b32.xlu0 %v503_v28, 256 }
 0x117   : > { %494 = vbcast.lane.b32.xlu1 %v484_v26, 272  ;;  %460 = vbcast.lane.b32.xlu0 %v446_v22, 280 }
 0x11b   : > { %528 = vbcast.lane.b32.xlu1 %v522_v30, 264  ;;  %524 = vbcast.lane.b32.xlu0 %v522_v30, 256 }
 0x11f   : > { %513 = vbcast.lane.b32.xlu1 %v503_v28, 272  ;;  %479 = vbcast.lane.b32.xlu0 %v465_v24, 280 }
 0x123   : > { %547 = vbcast.lane.b32.xlu1 %v541_v32, 264  ;;  %543 = vbcast.lane.b32.xlu0 %v541_v32, 256 }
 0x127   : > { %498 = vbcast.lane.b32.xlu1 %v484_v26, 280  ;;  %532 = vbcast.lane.b32.xlu0 %v522_v30, 272 }
 0x12b   : > { %517 = vbcast.lane.b32.xlu1 %v503_v28, 280  ;;  %551 = vbcast.lane.b32.xlu0 %v541_v32, 272 }
 0x12f   : > { %555 = vbcast.lane.b32.xlu1 %v541_v32, 280  ;;  %536 = vbcast.lane.b32.xlu0 %v522_v30, 280 }
 0x133   : > { %642 = vperm.xlu0 %1278, %v624_v33  }
 0x165   : > { %v430_v38 = vpop.permute.xlu1 %429  ;;  %v411_v39 = vpop.permute.xlu0 %410 }
 0x166   : > { %v561_v40 = vadd.f32 %v430_v38, %v1619_v37  ;;  %v557_v41 = vadd.f32 %v411_v39, %v1619_v37 }
 0x168   : > { %1280 = vtanh.f32 %v561_v40 }
 0x169   : > { %1282 = vtanh.f32 %v557_v41  ;;  %v434_v43 = vpop.permute.xlu1 %433  ;;  %v415_v44 = vpop.permute.xlu0 %414 }
 0x16a   : > { %v562_v45 = vadd.f32 %v434_v43, %v1624_v42  ;;  %v558_v46 = vadd.f32 %v415_v44, %v1624_v42 }
 0x16c   : > { %1284 = vtanh.f32 %v562_v45 }
 0x16d   : > { %1286 = vtanh.f32 %v558_v46  ;;  %v453_v47 = vpop.permute.xlu1 %452  ;;  %v449_v48 = vpop.permute.xlu0 %448 }
 0x16e   : > { %v566_v49 = vadd.f32 %v453_v47, %v1624_v42  ;;  %v565_v50 = vadd.f32 %v449_v48, %v1619_v37 }
 0x170   : > { %1288 = vtanh.f32 %v566_v49 }
 0x171   : > { %1290 = vtanh.f32 %v565_v50  ;;  %v438_v52 = vpop.permute.xlu1 %437  ;;  %v419_v53 = vpop.permute.xlu0 %418 }
 0x172   : > { %v1281_v54 = vpop.eup %1280  ;;  %v563_v55 = vadd.f32 %v438_v52, %v1631_v51  ;;  %v559_v56 = vadd.f32 %v419_v53, %v1631_v51 }
 0x173   : > { %v1283_v57 = vpop.eup %1282  ;;  %v649_v58 = vmul.f32 %v1281_v54, %v1611_v36 }
 0x174   : > { %v645_v59 = vmul.f32 %v1283_v57, %v1611_v36  ;;  %1292 = vtanh.f32 %v563_v55 }
 0x175   : > { %1294 = vtanh.f32 %v559_v56  ;;  %v472_v60 = vpop.permute.xlu1 %471  ;;  %v468_v61 = vpop.permute.xlu0 %467  ;;  %v691_v4 = vsel %vm677_vm2, %v649_v58, 0.0 }
 0x176   : > { %v1285_v62 = vpop.eup %1284  ;;  %v570_v63 = vadd.f32 %v472_v60, %v1624_v42  ;;  %v569_v0 = vadd.f32 %v468_v61, %v1619_v37  ;;  %v678_v5 = vsel %vm677_vm2, %v645_v59, 0.0 }
 0x177   : > { %v1287_v1 = vpop.eup %1286  ;;  %v650_v2 = vmul.f32 %v1285_v62, %v1606_v34 }
 0x178   : > { %v646_v3 = vmul.f32 %v1287_v1, %v1606_v34  ;;  %1296 = vtanh.f32 %v570_v63 }
 0x179   : > { %v692_v6 = vsel %vm677_vm2, %v650_v2, 0.0  ;;  %1298 = vtanh.f32 %v569_v0  ;;  %v487_v7 = vpop.permute.xlu1 %486  ;;  %v457_v8 = vpop.permute.xlu0 %456 }
 0x17a   : > { %v1289_v9 = vpop.eup %1288  ;;  %v693_v10 = vadd.f32 %v692_v6, %v691_v4  ;;  %v679_v11 = vsel %vm677_vm2, %v646_v3, 0.0  ;;  %v573_v12 = vadd.f32 %v487_v7, %v1619_v37  ;;  %v567_v13 = vadd.f32 %v457_v8, %v1631_v51 }
 0x17b   : > { %v1291_v14 = vpop.eup %1290  ;;  %v680_v15 = vadd.f32 %v679_v11, %v678_v5  ;;  %v654_v16 = vmul.f32 %v1289_v9, %v1606_v34 }
 0x17c   : > { %v653_v17 = vmul.f32 %v1291_v14, %v1611_v36  ;;  %1300 = vtanh.f32 %v573_v12 }
 0x17d   : > { %v705_v18 = vsel %vm677_vm2, %v654_v16, 0.0  ;;  %1302 = vtanh.f32 %v567_v13  ;;  %v1650_v19 = vpop.permute.xlu1 %422  ;;  %v491_v20 = vpop.permute.xlu0 %490 }
 0x17e   : > { %v1293_v21 = vpop.eup %1292  ;;  %v704_v22 = vsel %vm677_vm2, %v653_v17, 0.0  ;;  %v574_v23 = vadd.f32 %v491_v20, %v1624_v42 }
 0x17f   : > { %v1295_v24 = vpop.eup %1294  ;;  %v706_v25 = vadd.f32 %v705_v18, %v704_v22  ;;  %v651_v26 = vmul.f32 %v1293_v21, %v1609_v35 }
 0x180   : > { %v647_v27 = vmul.f32 %v1295_v24, %v1609_v35  ;;  %1304 = vtanh.f32 %v574_v23 }
 0x181   : > { %v694_v28 = vsel %vm677_vm2, %v651_v26, 0.0  ;;  %v476_v29 = vpop.permute.xlu1 %475  ;;  %v1657_v30 = vpop.permute.xlu0 %441 }
 0x182   : > { %v1297_v31 = vpop.eup %1296  ;;  %v1659_v32 = vadd.f32 %v694_v28, %v693_v10  ;;  %v681_v33 = vsel %vm677_vm2, %v647_v27, 0.0  ;;  %v571_v38 = vadd.f32 %v476_v29, %v1631_v51 }
 0x183   : > { %v1299_v39 = vpop.eup %1298  ;;  %v1663_v40 = vadd.f32 %v681_v33, %v680_v15  ;;  %v658_v41 = vmul.f32 %v1297_v31, %v1606_v34 }
 0x184   : > { %v657_v43 = vmul.f32 %v1299_v39, %v1611_v36  ;;  %1306 = vtanh.f32 %v571_v38 }
 0x185   : > { %v718_v44 = vsel %vm677_vm2, %v658_v41, 0.0  ;;  %v510_v45 = vpop.permute.xlu1 %509  ;;  %v506_v46 = vpop.permute.xlu0 %505  ;;  %v404_v41 = vld [vmem:[%s1616_s27 + $0x18] sm:$0xff]  ;;  %s1478_s27 = smov [#allocation4]  }
 0x186   : > { %v1301_v47 = vpop.eup %1300  ;;  %v717_v48 = vsel %vm677_vm2, %v657_v43, 0.0  ;;  %v578_v49 = vadd.f32 %v510_v45, %v1624_v42  ;;  %v577_v50 = vadd.f32 %v506_v46, %v1619_v37  ;;  %s1366_s28 = sshll.u32 %s1478_s27, 4  ;;  %s1367_s28 = int_to_ptr.vmem [resolvable:$false] %s1366_s28 }
 0x187   : > { %v1303_v52 = vpop.eup %1302  ;;  %v719_v53 = vadd.f32 %v718_v44, %v717_v48  ;;  %v661_v54 = vmul.f32 %v1301_v47, %v1611_v36  ;;  %v560_v47 = vadd.f32 %v1650_v19, %v404_v41  ;;  %s1368_s8 = scalar_lea.vmem %s1367_s28, 256  ;;  %p1369_p1 = scmp.lt.s32.totalorder %s1032_s18, %s1367_s28 }
 0x188   : > { %v655_v55 = vmul.f32 %v1303_v52, %v1609_v35  ;;  %1308 = vtanh.f32 %v578_v49  ;;  %p1370_p2 = scmp.lt.s32.totalorder %s1368_s8, %s1362_s20 }
 0x189   : > { %1310 = vtanh.f32 %v577_v50  ;;  %v495_v56 = vpop.permute.xlu1 %494  ;;  %v461_v57 = vpop.permute.xlu0 %460  ;;  %v730_v2 = vsel %vm677_vm2, %v661_v54, 0.0  ;;  %v564_v50 = vadd.f32 %v1657_v30, %v404_v41 }
 0x18a   : > { %v707_v58 = vsel %vm677_vm2, %v655_v55, 0.0  ;;  %v575_v59 = vadd.f32 %v495_v56, %v1631_v51  ;;  %v1305_v60 = vpop.eup %1304  ;;  %v568_v54 = vadd.f32 %v461_v57, %v404_v41  ;;  %p1371_p3 = por %p1370_p2, %p1369_p1 }
 0x18b   : > { %v1675_v61 = vadd.f32 %v707_v58, %v706_v25  ;;  %v662_v62 = vmul.f32 %v1305_v60, %v1606_v34 }
 0x18c   : > { %1312 = vtanh.f32 %v575_v59  ;;  %p1372_p5 = pnand %p1371_p3, %p1365_p0 }
 0x18d   : > { %v529_v63 = vpop.permute.xlu1 %528  ;;  %v525_v0 = vpop.permute.xlu0 %524  ;;  %v731_v3 = vsel %vm677_vm2, %v662_v62, 0.0 }
 0x18e   : > { %v1307_v1 = vpop.eup %1306  ;;  %v582_v4 = vadd.f32 %v529_v63, %v1624_v42  ;;  %v581_v5 = vadd.f32 %v525_v0, %v1619_v37  ;;  %v732_v6 = vadd.f32 %v731_v3, %v730_v2 }
 0x18f   : > { %v659_v7 = vmul.f32 %v1307_v1, %v1609_v35 }
 0x190   : > { %1314 = vtanh.f32 %v582_v4 }
 0x191   : > { %v720_v8 = vsel %vm677_vm2, %v659_v7, 0.0  ;;  %1316 = vtanh.f32 %v581_v5  ;;  %v514_v9 = vpop.permute.xlu1 %513  ;;  %v480_v10 = vpop.permute.xlu0 %479 }
 0x192   : > { %v1309_v11 = vpop.eup %1308  ;;  %v1684_v12 = vadd.f32 %v720_v8, %v719_v53  ;;  %v579_v13 = vadd.f32 %v514_v9, %v1631_v51  ;;  %v572_v56 = vadd.f32 %v480_v10, %v404_v41 }
 0x193   : > { %v1311_v14 = vpop.eup %1310  ;;  %v666_v15 = vmul.f32 %v1309_v11, %v1606_v34 }
 0x194   : > { %v665_v16 = vmul.f32 %v1311_v14, %v1611_v36  ;;  %1318 = vtanh.f32 %v579_v13 }
 0x195   : > { %v744_v17 = vsel %vm677_vm2, %v666_v15, 0.0  ;;  %v548_v18 = vpop.permute.xlu1 %547  ;;  %v544_v20 = vpop.permute.xlu0 %543 }
 0x196   : > { %v1313_v21 = vpop.eup %1312  ;;  %v743_v22 = vsel %vm677_vm2, %v665_v16, 0.0  ;;  %v586_v23 = vadd.f32 %v548_v18, %v1624_v42  ;;  %v585_v24 = vadd.f32 %v544_v20, %v1619_v37 }
 0x197   : > { %v745_v25 = vadd.f32 %v744_v17, %v743_v22  ;;  %v663_v26 = vmul.f32 %v1313_v21, %v1609_v35 }
 0x198   : > { %1320 = vtanh.f32 %v586_v23 }
 0x199   : > { %v733_v27 = vsel %vm677_vm2, %v663_v26, 0.0  ;;  %1322 = vtanh.f32 %v585_v24  ;;  %v499_v28 = vpop.permute.xlu1 %498  ;;  %v533_v29 = vpop.permute.xlu0 %532 }
 0x19a   : > { %v1315_v31 = vpop.eup %1314  ;;  %v1695_v33 = vadd.f32 %v733_v27, %v732_v6  ;;  %v583_v38 = vadd.f32 %v533_v29, %v1631_v51  ;;  %v576_v62 = vadd.f32 %v499_v28, %v404_v41 }
 0x19b   : > { %v1317_v39 = vpop.eup %1316  ;;  %v670_v42 = vmul.f32 %v1315_v31, %v1606_v34 }
 0x19c   : > { %v669_v37 = vmul.f32 %v1317_v39, %v1611_v36  ;;  %1324 = vtanh.f32 %v583_v38 }
 0x19d   : > { %v757_v43 = vsel %vm677_vm2, %v670_v42, 0.0  ;;  %v518_v44 = vpop.permute.xlu1 %517  ;;  %v552_v45 = vpop.permute.xlu0 %551 }
 0x19e   : > { %v1319_v46 = vpop.eup %1318  ;;  %v756_v48 = vsel %vm677_vm2, %v669_v37, 0.0  ;;  %v587_v49 = vadd.f32 %v552_v45, %v1631_v51  ;;  %v580_v0 = vadd.f32 %v518_v44, %v404_v41 }
 0x19f   : > { %v758_v52 = vadd.f32 %v757_v43, %v756_v48  ;;  %v667_v53 = vmul.f32 %v1319_v46, %v1609_v35 }
 0x1a0   : > { %1326 = vtanh.f32 %v587_v49 }
 0x1a1   : > { %v746_v55 = vsel %vm677_vm2, %v667_v53, 0.0  ;;  %v556_v58 = vpop.permute.xlu1 %555  ;;  %1328 = vtanh.f32 %v560_v47  ;;  %v537_v19 = vpop.permute.xlu0 %536 }
 0x1a2   : > { %v1321_v59 = vpop.eup %1320  ;;  %v747_v60 = vadd.f32 %v746_v55, %v745_v25  ;;  %1330 = vtanh.f32 %v564_v50  ;;  %v588_v1 = vadd.f32 %v556_v58, %v404_v41  ;;  %v584_v2 = vadd.f32 %v537_v19, %v404_v41 }
 0x1a3   : > { %v1323_v63 = vpop.eup %1322  ;;  %v674_v51 = vmul.f32 %v1321_v59, %v1606_v34  ;;  %1332 = vtanh.f32 %v568_v54 }
 0x1a4   : > { %v673_v30 = vmul.f32 %v1323_v63, %v1611_v36  ;;  %1334 = vtanh.f32 %v572_v56 }
 0x1a5   : > { %v770_v57 = vsel %vm677_vm2, %v674_v51, 0.0  ;;  %1336 = vtanh.f32 %v576_v62 }
 0x1a6   : > { %v769_v3 = vsel %vm677_vm2, %v673_v30, 0.0  ;;  %v1325_v4 = vpop.eup %1324  ;;  %1338 = vtanh.f32 %v580_v0 }
 0x1a7   : > { %v771_v5 = vadd.f32 %v770_v57, %v769_v3  ;;  %v671_v6 = vmul.f32 %v1325_v4, %v1609_v35  ;;  %1340 = vtanh.f32 %v588_v1 }
 0x1a8   : > { %1342 = vtanh.f32 %v584_v2 }
 0x1a9   : > { %v759_v34 = vsel %vm677_vm2, %v671_v6, 0.0 }
 0x1aa   : > { %v1327_v7 = vpop.eup %1326  ;;  %v760_v8 = vadd.f32 %v759_v34, %v758_v52 }
 0x1ab   : > { %v1329_v36 = vpop.eup %1328  ;;  %v675_v9 = vmul.f32 %v1327_v7, %v1609_v35 }
 0x1ac   : > { %v1331_v10 = vpop.eup %1330 }
 0x1ad   : > { %v1333_v11 = vpop.eup %1332  ;;  %v772_v13 = vsel %vm677_vm2, %v675_v9, 0.0 }
 0x1ae   : > { %v1335_v14 = vpop.eup %1334  ;;  %v773_v15 = vadd.f32 %v772_v13, %v771_v5 }
 0x1af   : > { %v1337_v16 = vpop.eup %1336 }
 0x1b0   : > { %v1339_v17 = vpop.eup %1338 }
 0x1b1   : > { %v1341_v18 = vpop.eup %1340 }
 0x1b2   : > { %v643_v20 = vpop.permute.xlu0 %642  ;;  %v1343_v21 = vpop.eup %1342 }
 0x1b3   : > { %v648_v22 = vmul.f32 %v1329_v36, %v643_v20  ;;  %v652_v23 = vmul.f32 %v1331_v10, %v643_v20  ;;  %v656_v24 = vmul.f32 %v1333_v11, %v643_v20  ;;  %v660_v25 = vmul.f32 %v1335_v14, %v643_v20 }
 0x1b4   : > { %v664_v26 = vmul.f32 %v1337_v16, %v643_v20  ;;  %v668_v27 = vmul.f32 %v1339_v17, %v643_v20  ;;  %v672_v28 = vmul.f32 %v1343_v21, %v643_v20  ;;  %v676_v29 = vmul.f32 %v1341_v18, %v643_v20 }
 0x1b5   : > { %v683_v35 = vsel %vm677_vm2, %v648_v22, 0.0  ;;  %v696_v31 = vsel %vm677_vm2, %v652_v23, 0.0  ;;  %v709_v38 = vsel %vm677_vm2, %v656_v24, 0.0  ;;  %v722_v39 = vsel %vm677_vm2, %v660_v25, 0.0 }
 0x1b6   : > { %v684_v41 = vadd.f32 %v683_v35, %v1663_v40  ;;  %v697_v42 = vadd.f32 %v696_v31, %v1659_v32  ;;  %v710_v37 = vadd.f32 %v709_v38, %v1675_v61  ;;  %v723_v43 = vadd.f32 %v722_v39, %v1684_v12 }
 0x1b7   : > { %v735_v44 = vsel %vm677_vm2, %v664_v26, 0.0  ;;  %v748_v45 = vsel %vm677_vm2, %v668_v27, 0.0  ;;  %v761_v46 = vsel %vm677_vm2, %v672_v28, 0.0  ;;  %v774_v47 = vsel %vm677_vm2, %v676_v29, 0.0 }
 0x1b8   : > { %v685_v48 = vrot.slane %v684_v41, 4  ;;  %v698_v49 = vrot.slane %v697_v42, 4  ;;  %v711_v50 = vrot.slane %v710_v37, 4  ;;  %v724_v52 = vrot.slane %v723_v43, 4 }
 0x1b9   : > { %v736_v40 = vadd.f32 %v735_v44, %v1695_v33  ;;  %v749_v53 = vadd.f32 %v748_v45, %v747_v60  ;;  %v762_v32 = vadd.f32 %v761_v46, %v760_v8  ;;  %v775_v54 = vadd.f32 %v774_v47, %v773_v15 }
 0x1ba   : > { %v686_v61 = vadd.f32 %v685_v48, %v684_v41  ;;  %v699_v12 = vadd.f32 %v698_v49, %v697_v42  ;;  %v712_v55 = vadd.f32 %v711_v50, %v710_v37  ;;  %v725_v56 = vadd.f32 %v724_v52, %v723_v43 }
 0x1bb   : > { %v737_v58 = vrot.slane %v736_v40, 4  ;;  %v750_v59 = vrot.slane %v749_v53, 4  ;;  %v763_v62 = vrot.slane %v762_v32, 4  ;;  %v776_v19 = vrot.slane %v775_v54, 4 }
 0x1bc   : > { %v687_v63 = vrot.slane %v686_v61, 2  ;;  %v700_v51 = vrot.slane %v699_v12, 2  ;;  %v713_v0 = vrot.slane %v712_v55, 2  ;;  %v726_v30 = vrot.slane %v725_v56, 2 }
 0x1bd   : > { %v738_v1 = vadd.f32 %v737_v58, %v736_v40  ;;  %v751_v57 = vadd.f32 %v750_v59, %v749_v53  ;;  %v764_v2 = vadd.f32 %v763_v62, %v762_v32  ;;  %v777_v33 = vadd.f32 %v776_v19, %v775_v54 }
 0x1be   : > { %v688_v60 = vadd.f32 %v687_v63, %v686_v61  ;;  %v701_v3 = vadd.f32 %v700_v51, %v699_v12  ;;  %v714_v4 = vadd.f32 %v713_v0, %v712_v55  ;;  %v727_v5 = vadd.f32 %v726_v30, %v725_v56 }
 0x1bf   : > { %v739_v6 = vrot.slane %v738_v1, 2  ;;  %v752_v34 = vrot.slane %v751_v57, 2  ;;  %v765_v7 = vrot.slane %v764_v2, 2  ;;  %v778_v8 = vrot.slane %v777_v33, 2 }
 0x1c0   : > { %v689_v36 = vrot.slane %v688_v60, 1  ;;  %v702_v9 = vrot.slane %v701_v3, 1  ;;  %v715_v10 = vrot.slane %v714_v4, 1  ;;  %v728_v11 = vrot.slane %v727_v5, 1 }
 0x1c1   : > { %v740_v13 = vadd.f32 %v739_v6, %v738_v1  ;;  %v753_v14 = vadd.f32 %v752_v34, %v751_v57  ;;  %v766_v15 = vadd.f32 %v765_v7, %v764_v2  ;;  %v779_v16 = vadd.f32 %v778_v8, %v777_v33 }
 0x1c2   : > { %v690_v17 = vadd.f32 %v689_v36, %v688_v60  ;;  %v703_v18 = vadd.f32 %v702_v9, %v701_v3  ;;  %v716_v20 = vadd.f32 %v715_v10, %v714_v4  ;;  %v729_v25 = vadd.f32 %v728_v11, %v727_v5 }
 0x1c3   : > { %v741_v21 = vrot.slane %v740_v13, 1  ;;  %v754_v22 = vrot.slane %v753_v14, 1  ;;  %v767_v23 = vrot.slane %v766_v15, 1  ;;  %v780_v26 = vrot.slane %v779_v16, 1 }
 0x1c4   : > { %v791_v24 = vsel %vm790_vm3, %v703_v18, %v690_v17 }
 0x1c5   : > { %v742_v27 = vadd.f32 %v741_v21, %v740_v13  ;;  %v793_v28 = vsel %vm792_vm4, %v716_v20, %v791_v24  ;;  %v755_v29 = vadd.f32 %v754_v22, %v753_v14  ;;  %v768_v31 = vadd.f32 %v767_v23, %v766_v15  ;;  %v923_v21 = vld [vmem:[%s321_s11] sm:$0xff] }
 0x1c6   : > { %v795_v35 = vsel %vm794_vm5, %v729_v25, %v793_v28  ;;  %v781_v39 = vadd.f32 %v780_v26, %v779_v16  ;;  %1204 = vmatpush3.msra.mxu1 %v923_v21 }
 0x1c7   : > { %v797_v38 = vsel %vm796_vm6, %v742_v27, %v795_v35 }
 0x1c8   : > { %v799_v41 = vsel %vm798_vm7, %v755_v29, %v797_v38 }
 0x1c9   : > { %v801_v42 = vsel %vm800_vm8, %v768_v31, %v799_v41 }
 0x1ca   : > { %v803_v37 = vsel %vm802_vm9, %v781_v39, %v801_v42 }
 0x1cb   : > { %v805_v43 = vsel %vm677_vm2, %v803_v37, -inf }
 0x1cc   : > { %806 = vmax.xlane.f32.xlu1 %v805_v43 }
 0x259   : > { %v807_v44 = vpop.xlane.xlu1 %806 }
 0x25a   : > { %v809_v45 = vrot.slane %v807_v44, 1  ;;  %v810_v46 = vrot.slane %v807_v44, 2  ;;  %v811_v47 = vrot.slane %v807_v44, 3  ;;  %v812_v48 = vrot.slane %v807_v44, 4 }
 0x25b   : > { %v813_v49 = vrot.slane %v807_v44, 5  ;;  %v814_v50 = vrot.slane %v807_v44, 6  ;;  %v815_v52 = vrot.slane %v807_v44, 7  ;;  %v824_v40 = vsub.f32 %v690_v17, %v807_v44 }
 0x25c   : > { %v825_v53 = vsub.f32 %v703_v18, %v809_v45  ;;  %v826_v32 = vsub.f32 %v716_v20, %v810_v46  ;;  %v827_v54 = vsub.f32 %v729_v25, %v811_v47  ;;  %v828_v61 = vsub.f32 %v742_v27, %v812_v48 }
 0x25d   : > { %v829_v12 = vsub.f32 %v755_v29, %v813_v49  ;;  %v830_v55 = vsub.f32 %v768_v31, %v814_v50  ;;  %v832_v56 = vmul.f32 1.442695, %v824_v40  ;;  %v831_v58 = vsub.f32 %v781_v39, %v815_v52 }
 0x25e   : > { %v834_v59 = vmul.f32 1.442695, %v825_v53  ;;  %v836_v62 = vmul.f32 1.442695, %v826_v32  ;;  %v838_v19 = vmul.f32 1.442695, %v827_v54 }
 0x25f   : > { %1344 = vpow2.f32 %v832_v56  ;;  %v840_v63 = vmul.f32 1.442695, %v828_v61  ;;  %v842_v51 = vmul.f32 1.442695, %v829_v12  ;;  %v844_v0 = vmul.f32 1.442695, %v830_v55 }
 0x260   : > { %1346 = vpow2.f32 %v834_v59  ;;  %v846_v30 = vmul.f32 1.442695, %v831_v58 }
 0x261   : > { %1348 = vpow2.f32 %v836_v62 }
 0x262   : > { %1350 = vpow2.f32 %v838_v19 }
 0x263   : > { %1352 = vpow2.f32 %v840_v63 }
 0x264   : > { %1354 = vpow2.f32 %v842_v51 }
 0x265   : > { %1356 = vpow2.f32 %v844_v0 }
 0x266   : > { %1358 = vpow2.f32 %v846_v30 }
 0x269   : > { %v1345_v1 = vpop.eup %1344 }
 0x26a   : > { %v1347_v57 = vpop.eup %1346 }
 0x26b   : > { %v1349_v2 = vpop.eup %1348  ;;  %v856_v33 = vrot.slane %v1347_v57, 7 }
 0x26c   : > { %v1351_v60 = vpop.eup %1350  ;;  %v858_v3 = vrot.slane %v1349_v2, 6 }
 0x26d   : > { %v1353_v4 = vpop.eup %1352  ;;  %v857_v5 = vsel %vm790_vm3, %v856_v33, %v1345_v1  ;;  %v860_v6 = vrot.slane %v1351_v60, 5 }
 0x26e   : > { %v1355_v34 = vpop.eup %1354  ;;  %v859_v7 = vsel %vm792_vm4, %v858_v3, %v857_v5  ;;  %v862_v8 = vrot.slane %v1353_v4, 4 }
 0x26f   : > { %v1357_v36 = vpop.eup %1356  ;;  %v861_v9 = vsel %vm794_vm5, %v860_v6, %v859_v7  ;;  %v864_v10 = vrot.slane %v1355_v34, 3 }
 0x270   : > { %v1359_v11 = vpop.eup %1358  ;;  %v863_v13 = vsel %vm796_vm6, %v862_v8, %v861_v9  ;;  %v866_v14 = vrot.slane %v1357_v36, 2 }
 0x271   : > { %v865_v15 = vsel %vm798_vm7, %v864_v10, %v863_v13  ;;  %v868_v16 = vrot.slane %v1359_v11, 1 }
 0x272   : > { %v867_v17 = vsel %vm800_vm8, %v866_v14, %v865_v15 }
 0x273   : > { %v869_v18 = vsel %vm802_vm9, %v868_v16, %v867_v17 }
 0x274   : > { %v871_v20 = vsel %vm677_vm2, %v869_v18, 0.0 }
 0x275   : > { %872 = vadd.xlane.f32.xlu0 %v871_v20 }
 0x302   : > { %v873_v22 = vpop.xlane.xlu0 %872 }
 0x303   : > { %1360 = vrcp.f32 %v873_v22 }
 0x30d   : > { %v1361_v23 = vpop.eup %1360 }
 0x30e   : > { %v876_v24 = vrot.slane %v1361_v23, 1  ;;  %v877_v25 = vrot.slane %v1361_v23, 2  ;;  %v878_v26 = vrot.slane %v1361_v23, 3  ;;  %v879_v27 = vrot.slane %v1361_v23, 4 }
 0x30f   : > { %v880_v28 = vrot.slane %v1361_v23, 5  ;;  %v881_v29 = vrot.slane %v1361_v23, 6  ;;  %v882_v35 = vrot.slane %v1361_v23, 7  ;;  %v891_v42 = vmul.f32 %v1361_v23, %v1345_v1 }
 0x310   : > { %v892_v31 = vmul.f32 %v1347_v57, %v876_v24  ;;  %v893_v38 = vmul.f32 %v1349_v2, %v877_v25  ;;  %v894_v39 = vmul.f32 %v1351_v60, %v878_v26  ;;  %v895_v41 = vmul.f32 %v1353_v4, %v879_v27 }
 0x311   : > { %v896_v37 = vmul.f32 %v1355_v34, %v880_v28  ;;  %v897_v45 = vmul.f32 %v1357_v36, %v881_v29  ;;  %v898_v46 = vmul.f32 %v1359_v11, %v882_v35 }
 0x312   : > { %v907_v43 = vrot.slane %v892_v31, 7  ;;  %v909_v44 = vrot.slane %v893_v38, 6  ;;  %v911_v48 = vrot.slane %v894_v39, 5  ;;  %v913_v50 = vrot.slane %v895_v41, 4 }
 0x313   : > { %v915_v40 = vrot.slane %v896_v37, 3  ;;  %v917_v32 = vrot.slane %v897_v45, 2  ;;  %v919_v61 = vrot.slane %v898_v46, 1 }
 0x314   : > { %v908_v47 = vsel %vm790_vm3, %v907_v43, %v891_v42 }
 0x315   : > { %v910_v49 = vsel %vm792_vm4, %v909_v44, %v908_v47 }
 0x316   : > { %v912_v52 = vsel %vm794_vm5, %v911_v48, %v910_v49 }
 0x317   : > { %v914_v53 = vsel %vm796_vm6, %v913_v50, %v912_v52 }
 0x318   : > { %v916_v54 = vsel %vm798_vm7, %v915_v40, %v914_v53 }
 0x319   : > { %v918_v12 = vsel %vm800_vm8, %v917_v32, %v916_v54 }
 0x31a   : > { %v920_v55 = vsel %vm802_vm9, %v919_v61, %v918_v12 }
 0x31b   : > { %1206 = vmatmul.mubr.msk.f32.vlgmr.msra.gmra.mrb[0].mxu1 %vm677_vm2, %v920_v55  ;;  %922 = vst.msk [vmem:[%s305_s13] sm:$0xff] %vm677_vm2, %v920_v55 }
 0x31c   : > { %1375 = shalt.err (!%p1372_p5)
}
 0x31d   : > { %s1376_s11 = scalar_lea.hbm %s1771_s17, 128  ;;  %s1380_s16 = scalar_lea.hbm %s1852_s6, 256 }
 0x31e   : > { %p1377_p6 = scmp.ne.s32.totalorder %s1771_s17, %s1376_s11  ;;  %p1381_p10 = scmp.lt.u32.totalorder %s1771_s17, %s1852_s6 }
 0x31f   : > { %p1382_p11 = scmp.lt.u32.totalorder %s1380_s16, %s1376_s11  ;;  %p1384_p13 = scmp.lt.u32.totalorder %s1376_s11, %s1771_s17 }
 0x320   : > { %p1378_p7 = pnand %p1377_p6, %p1555_p4 }
 0x321   : > { %p1383_p12 = por %p1382_p11, %p1381_p10 }
 0x322   : > { %p1379_p9 = pneg %p1378_p7 }
 0x323   : > { %p1385_p0 = por %p1384_p13, %p1383_p12 }
 0x325   : > { %p1386_p1 = pnand %p1385_p0, %p1379_p9 }
 0x327   : > { %1389 = shalt.err (!%p1386_p1)
}
 0x328   : > { %1215 = dma.vmem_to_hbm [thread:$0]  (%p1555_p4), %s1032_s18, 128, %s1771_s17, %s1003_s19  }
 0x329   : > { %s298_s20 = scalar_lea.vmem [#allocation2], %s1170_s12  ;;  %s1800_s11 = scalar_lea.hbm %s1851_s5, %s1180_s14 }
 0x32a   : > { %s1017_s8 = sshll.u32 %s298_s20, 4  ;;  %s998_s16 = scalar_lea.sflag [#allocation3], %s1751_s30  ;;  %s1793_s8 = int_to_ptr.vmem [resolvable:$true] %s1017_s8 }
 0x32b   : > { %s1390_s27 = scalar_lea.vmem %s1793_s8, 128  ;;  %s1479_s12 = smov [#allocation2]  }
 0x32c   : > { %p1391_p2 = scmp.ne.s32.totalorder %s1793_s8, %s1390_s27  ;;  %s1394_s17 = sshll.u32 %s1479_s12, 4  ;;  %s1395_s17 = int_to_ptr.vmem [resolvable:$false] %s1394_s17 }
 0x32d   : > { %s1396_s24 = scalar_lea.vmem %s1395_s17, 256  ;;  %p1397_p6 = scmp.lt.s32.totalorder %s1793_s8, %s1395_s17 }
 0x32e   : > { %p1392_p3 = pnand %p1391_p2, %p1555_p4  ;;  %p1398_p7 = scmp.lt.s32.totalorder %s1396_s24, %s1390_s27 }
 0x330   : > { %p1393_p5 = pneg %p1392_p3  ;;  %p1399_p9 = por %p1398_p7, %p1397_p6 }
 0x332   : > { %p1400_p10 = pnand %p1399_p9, %p1393_p5 }
 0x3ee   : > { %v992_v56 = vpop.f32.mrb[0].mxu1 }
 0x3ef   : > { %996 = vst [vmem:[%s298_s20] sm:$0xff] %v992_v56  ;;  %v1207_v58 = vpop.f32.mrb[1].mxu1 }
 0x3f0   : > { %1403 = shalt.err (!%p1400_p10)
}
 0x3f1   : > { %s1404_s30 = scalar_lea.hbm %s1800_s11, 128  ;;  %s1408_s19 = scalar_lea.hbm %s1851_s5, 256 }
 0x3f2   : > { %p1405_p11 = scmp.ne.s32.totalorder %s1800_s11, %s1404_s30  ;;  %p1409_p0 = scmp.lt.u32.totalorder %s1800_s11, %s1851_s5 }
 0x3f3   : > { %p1410_p1 = scmp.lt.u32.totalorder %s1408_s19, %s1404_s30  ;;  %p1412_p3 = scmp.lt.u32.totalorder %s1404_s30, %s1800_s11 }
 0x3f4   : > { %p1406_p12 = pnand %p1405_p11, %p1555_p4 }
 0x3f5   : > { %p1411_p2 = por %p1410_p1, %p1409_p0 }
 0x3f6   : > { %p1407_p13 = pneg %p1406_p12 }
 0x3f7   : > { %p1413_p5 = por %p1412_p3, %p1411_p2 }
 0x3f9   : > { %p1414_p6 = pnand %p1413_p5, %p1407_p13 }
 0x3fb   : > { %1417 = shalt.err (!%p1414_p6)
}
 0x3fc   : > { %1214 = dma.vmem_to_hbm [thread:$0]  (%p1555_p4), %s1793_s8, 128, %s1800_s11, %s998_s16  }
 0x3fd PF: > { %p1225_p7 = scmp.ge.s32.totalorder %s1472_s26, 2  ;;  %s1043_s13 = sand.u32 1, %s1452_s21  }
 0x3fe   : > { %s1044_s15 = scalar_lea.sflag [#allocation3], %s1043_s13 }
 0x3ff   : > { %p1219_p9 = pnand %p1225_p7, %p1562_p8 }
 0x401   : > { %1443 = dma.done.wait (!%p1219_p9), %s1044_s15, 128  }
 0x402   : > { %1445 = vsyncadd (!%p1219_p9), %s1044_s15, 4294967168  ;;  %s1053_s27 = scalar_lea.sflag [#allocation5], %s1043_s13 }
 0x403   : > { %1447 = dma.done.wait (!%p1219_p9), %s1053_s27, 128  }
 0x404   : > { %1449 = vsyncadd (!%p1219_p9), %s1053_s27, 4294967168  ;;  %s23_s26 = sadd.s32 1, %s1472_s26   ;;  %s1855_s21 = smov %s1456_s22 }
 0x405   : > { %p20_p10 = scmp.ge.s32.totalorder %s23_s26, 4   ;;  %s1856_s22 = smov %s1460_s23 }
 0x406   : > { %s1857_s23 = smov %s1568_s10  ;;  %s1858_s24 = smov %s1468_s25 }
 0x407   : > { %s1859_s25 = smov %s1861_s29  ;;  %22 = sbr.rel (!%p20_p10) target bundleno = 6 (0x6), region = 98 }
 0x40e   :  { %1058 = vsyncpa [#allocation3], 1 }
 0x40f   :  { %1060 = vsyncpa [#allocation3 + $0x1], 1 }
 0x410   :  { %1061 = vsyncpa [#allocation5], 1 }
 0x411   :  { %1063 = vsyncpa [#allocation5 + $0x1], 1 }

// kernel: tpu_custom_call.1
= control target key start
LH: loop header
LB: loop body
LE: loop exit
PB: predicated region body
PF: predicated region fallthrough
CT: control target
= control target key end

     0   :  { %12 = vsyncpa [#allocation3], 0  ;;  %s1840_s0 = inlined_call_operand.vmem [shape: f32[2,8,32], index: 0, kind: input, shape index: {}]   ;;  %s1841_s1 = inlined_call_operand.vmem [shape: f32[2,32,8], index: 1, kind: input, shape index: {}]   ;;  %s1842_s2 = inlined_call_operand.vmem [shape: f32[2,8,128], index: 2, kind: input, shape index: {}]   ;;  %s1843_s3 = inlined_call_operand.vmem [shape: f32[32,32], index: 3, kind: input, shape index: {}]   ;;  %s1844_s4 = inlined_call_operand.vmem [shape: f32[32,1], index: 4, kind: input, shape index: {}]   ;;  %s1845_s5 = inlined_call_operand.hbm [shape: f32[2,8,128], index: 5, kind: output, shape index: {0}]   ;;  %s1846_s6 = inlined_call_operand.hbm [shape: f32[2,8,8], index: 6, kind: output, shape index: {1}]  }
   0x1   :  { %14 = vsyncpa [#allocation3 + $0x1], 0 }
   0x2   :  { %15 = vsyncpa [#allocation5], 0 }
   0x3   :  { %17 = vsyncpa [#allocation5 + $0x1], 0  ;;  %s1509_s21 = smov 0   ;;  %s1511_s22 = smov 0  }
   0x4   :  { %s1513_s23 = smov 0   ;;  %s1515_s24 = smov 0  }
   0x5   :  { %s1517_s25 = smov 0   ;;  %s1519_s26 = smov 0  }
   0x6 LB: > { %s1159_s27 = sadd.s32 4294967295, %s1466_s26   ;;  %s1160_s28 = sadd.s32 4294967294, %s1466_s26   ;;  %s1466_s26 = sphi %s1519_s26, %s23_s26   ;;  %s1462_s25 = sphi %s1517_s25, %s1853_s25   ;;  %s1458_s24 = sphi %s1515_s24, %s1852_s24   ;;  %s1454_s23 = sphi %s1513_s23, %s1851_s23   ;;  %s1450_s22 = sphi %s1511_s22, %s1850_s22   ;;  %s1446_s21 = sphi %s1509_s21, %s1849_s21  }
   0x7   : > { %s35_s29 = sadd.s32 1, %s1462_s25  ;;  %s166_s30 = sadd.s32 1, %s1454_s23 }
   0x8   : > { %p37_p0 = scmp.ge.s32.totalorder %s35_s29, 2  ;;  %p176_p1 = scmp.ne.s32.totalorder %s1454_s23, %s1450_s22 }
   0x9   : > { %p177_p2 = scmp.eq.s32.totalorder %s1159_s27, 1  ;;  %p182_p3 = scmp.ne.s32.totalorder %s1450_s22, %s1446_s21 }
   0xa   : > { %s1855_s29 = smov (%p37_p0, %s35_s29), 0  ;;  %p183_p5 = scmp.eq.s32.totalorder %s1160_s28, 1 }
   0xb   : > { %p1549_p4 = por %p177_p2, %p176_p1  ;;  %s161_s8 = ssub.s32 %s1462_s25, %s1855_s29 }
   0xc   : > { %p1163_p6 = scmp.ge.s32.totalorder %s1466_s26, 1  ;;  %p164_p7 = scmp.eq.s32.totalorder %s161_s8, 0 }
   0xd   : > { %p1556_p8 = por %p183_p5, %p182_p3  ;;  %p260_p9 = scmp.lt.s32.totalorder %s1466_s26, 3 }
   0xe   : > { %s1562_s10 = scalar_select %p164_p7, %s1454_s23, %s166_s30  }
   0xf   : > { %p261_p10 = pnand %p1163_p6, %p260_p9 }
  0x10   : > { %v323_v0 = vld [vmem:[%s1843_s3] sm:$0xff] (!%p261_p10)  ;;  %v324_v1 = vld [vmem:[%s1843_s3 + $0x8] sm:$0xff] (!%p261_p10)  ;;  %v325_v2 = vld [vmem:[%s1843_s3 + $0x10] sm:$0xff] (!%p261_p10)  ;;  %v1468_v3 = vmov (!%p261_p10), 0.0|0.0   ;;  %vm1469_vm0 = vmmov (!%p261_p10), 0   ;;  %v1470_v6 = vmov (!%p261_p10), 0.0   ;;  %v405_v13 = vlaneseq (!%p261_p10) }
  0x11   : > { %264 = sbr.rel (%p261_p10) target bundleno = 1021 (0x3fd), region = 40  ;;  %1202 = vmatprep.subr.bf16.mxu0 (!%p261_p10), %v1468_v3  ;;  %v1203_v4 = vpack.c.bf16 (!%p261_p10), %v324_v1, %v323_v0  ;;  %v326_v5 = vld [vmem:[%s1843_s3 + $0x18] sm:$0xff] (!%p261_p10)  ;;  %1194 = vmatprep.mubr.msk.f32.mxu0 (!%p261_p10), %vm1469_vm0, %v1470_v6  ;;  %p306_p11 = scmp.lt.s32.totalorder (!%p261_p10), %s1458_s24, 1  ;;  %v622_v7 = vld [vmem:[%s1844_s4 + $0x8] sm:$0xff] (!%p261_p10)  ;;  %v1471_v8 = vmov (!%p261_p10), 0   ;;  %v621_v9 = vld [vmem:[%s1844_s4] sm:$0xff] (!%p261_p10) }
  0x12   : > { %1273 = vset.pattern.permute.xlu1 (!%p261_p10), %v1471_v8  ;;  %1272 = vset.pattern.permute.xlu0 (!%p261_p10), %v1471_v8  ;;  %v1206_v10 = vpack.c.bf16 (!%p261_p10), %v326_v5, %v325_v2  ;;  %v623_v11 = vld [vmem:[%s1844_s4 + $0x10] sm:$0xff] (!%p261_p10)  ;;  %vm327_vm1 = vcmask (!%p261_p10), 261120   ;;  %v406_v14 = vshrl.u32 (!%p261_p10), %v405_v13, 7  ;;  %v624_v33 = vld [vmem:[%s1844_s4 + $0x18] sm:$0xff] (!%p261_p10)  ;;  %vm677_vm2 = vcmask (!%p261_p10), 64512   ;;  %s1174_s14 = sshll.u32 (!%p261_p10), %s1458_s24, 7 }
  0x13   : > { %1204 = vmatpush3.bf16.msra.mxu0 (!%p261_p10), %v1203_v4  ;;  %632 = vperm.xlu1 (!%p261_p10), %1273, %v622_v7   ;;  %vm790_vm3 = vcmask (!%p261_p10), 1041409   ;;  %vm792_vm4 = vcmask (!%p261_p10), 1042434   ;;  %vm794_vm5 = vcmask (!%p261_p10), 1043459   ;;  %vm796_vm6 = vcmask (!%p261_p10), 1044484   ;;  %s1765_s17 = scalar_lea.hbm (!%p261_p10), %s1846_s6, %s1174_s14 }
  0x14   : > { %1205 = vmatprep.subr.bf16.mxu0 (!%p261_p10), %v1468_v3  ;;  %627 = vperm.xlu0 (!%p261_p10), %1272, %v621_v9   ;;  %v426_v15 = vsub.s32 (!%p261_p10), 1, %v406_v14  ;;  %v407_v16 = vsub.s32 (!%p261_p10), 0, %v406_v14  ;;  %v445_v21 = vsub.s32 (!%p261_p10), 2, %v406_v14  ;;  %v464_v23 = vsub.s32 (!%p261_p10), 3, %v406_v14 }
  0x15   : > { %1197 = vmatprep.subr.mxu1 (!%p261_p10), %v1470_v6  ;;  %1199 = vmatprep.mubr.msk.f32.mxu1 (!%p261_p10), %vm1469_vm0, %v1470_v6  ;;  %v483_v25 = vsub.s32 (!%p261_p10), 4, %v406_v14  ;;  %v502_v27 = vsub.s32 (!%p261_p10), 5, %v406_v14  ;;  %v521_v29 = vsub.s32 (!%p261_p10), 6, %v406_v14  ;;  %v540_v31 = vsub.s32 (!%p261_p10), 7, %v406_v14 }
  0x16   : > { %vm798_vm7 = vcmask (!%p261_p10), 1045509   ;;  %vm800_vm8 = vcmask (!%p261_p10), 1046534   ;;  %vm802_vm9 = vcmask (!%p261_p10), 1047559  }
  0x17   : > { %1207 = vmatpush3.bf16.msra.mxu0 (!%p261_p10), %v1206_v10  ;;  %637 = vperm.xlu1 (!%p261_p10), %1273, %v623_v11  }
  0x18   : > { %s1585_s30 = scalar_select %p306_p11, %s1458_s24, 1 }
  0x1a   : > { %s1166_s12 = sshll.u32 %s1585_s30, 3  ;;  %s1178_s18 = sshll.u32 %s1585_s30, 5 }
  0x1b   : > { %s312_s15 = scalar_lea.vmem %s1840_s0, %s1166_s12  ;;  %s1610_s27 = scalar_lea.vmem %s1841_s1, %s1178_s18 }
  0x1c   : > { %v322_v12 = vld [vmem:[%s312_s15] sm:$0xff]  ;;  %v1618_v42 = vld [vmem:[%s1610_s27 + $0x8] sm:$0xff]  ;;  %v1625_v51 = vld [vmem:[%s1610_s27 + $0x10] sm:$0xff]  ;;  %s321_s11 = scalar_lea.vmem %s1842_s2, %s1166_s12  ;;  %s1745_s30 = sand.u32 1, %s1450_s22  }
  0x1d   : > { %1195 = vmatmul.mubr.msk.f32.vlgmr.msra.gmra.mrb[0].mxu0 %vm327_vm1, %v322_v12  ;;  %v1613_v37 = vld [vmem:[%s1610_s27] sm:$0xff]  ;;  %s1164_s12 = sshll.u32 %s1745_s30, 3  ;;  %s1003_s19 = scalar_lea.sflag [#allocation5], %s1745_s30 }
  0x1e   : > { %s305_s13 = scalar_lea.vmem [#allocation4], %s1164_s12 }
  0x1f   : > { %s1031_s18 = sshll.u32 %s305_s13, 4  ;;  %s1032_s18 = int_to_ptr.vmem [resolvable:$true] %s1031_s18 }
  0x20   : > { %s1356_s20 = scalar_lea.vmem %s1032_s18, 128 }
  0x21   : > { %p1357_p12 = scmp.ne.s32.totalorder %s1032_s18, %s1356_s20 }
  0x23   : > { %p1358_p13 = pnand %p1357_p12, %p1549_p4 }
  0x25   : > { %p1359_p0 = pneg %p1358_p13 }
  0x92   : > { %v1600_v34 = vpop.permute.xlu1 %632 }
  0x93   : > { %v1605_v36 = vpop.permute.xlu0 %627 }
  0x96   : > { %v1603_v35 = vpop.permute.xlu1 %637 }
  0xf0   : > { %v397_v17 = vpop.f32.mrb[0].mxu0 }
  0xf1   : > { %v1196_v18 = vpop.f32.mrb[1].mxu0  ;;  %v427_v19 = vrot.slane %v397_v17, %v426_v15  ;;  %v408_v20 = vrot.slane %v397_v17, %v407_v16  ;;  %v446_v22 = vrot.slane %v397_v17, %v445_v21  ;;  %v465_v24 = vrot.slane %v397_v17, %v464_v23 }
  0xf2   : > { %v484_v26 = vrot.slane %v397_v17, %v483_v25  ;;  %v503_v28 = vrot.slane %v397_v17, %v502_v27  ;;  %v522_v30 = vrot.slane %v397_v17, %v521_v29  ;;  %v541_v32 = vrot.slane %v397_v17, %v540_v31 }
  0xf3   : > { %429 = vbcast.lane.b32.xlu1 %v427_v19, 256  ;;  %410 = vbcast.lane.b32.xlu0 %v408_v20, 256 }
  0xf7   : > { %433 = vbcast.lane.b32.xlu1 %v427_v19, 264  ;;  %414 = vbcast.lane.b32.xlu0 %v408_v20, 264 }
  0xfb   : > { %452 = vbcast.lane.b32.xlu1 %v446_v22, 264  ;;  %448 = vbcast.lane.b32.xlu0 %v446_v22, 256 }
  0xff   : > { %437 = vbcast.lane.b32.xlu1 %v427_v19, 272  ;;  %418 = vbcast.lane.b32.xlu0 %v408_v20, 272 }
 0x103   : > { %471 = vbcast.lane.b32.xlu1 %v465_v24, 264  ;;  %467 = vbcast.lane.b32.xlu0 %v465_v24, 256 }
 0x107   : > { %486 = vbcast.lane.b32.xlu1 %v484_v26, 256  ;;  %456 = vbcast.lane.b32.xlu0 %v446_v22, 272 }
 0x10b   : > { %422 = vbcast.lane.b32.xlu1 %v408_v20, 280  ;;  %490 = vbcast.lane.b32.xlu0 %v484_v26, 264 }
 0x10f   : > { %475 = vbcast.lane.b32.xlu1 %v465_v24, 272  ;;  %441 = vbcast.lane.b32.xlu0 %v427_v19, 280 }
 0x113   : > { %509 = vbcast.lane.b32.xlu1 %v503_v28, 264  ;;  %505 = vbcast.lane.b32.xlu0 %v503_v28, 256 }
 0x117   : > { %494 = vbcast.lane.b32.xlu1 %v484_v26, 272  ;;  %460 = vbcast.lane.b32.xlu0 %v446_v22, 280 }
 0x11b   : > { %528 = vbcast.lane.b32.xlu1 %v522_v30, 264  ;;  %524 = vbcast.lane.b32.xlu0 %v522_v30, 256 }
 0x11f   : > { %513 = vbcast.lane.b32.xlu1 %v503_v28, 272  ;;  %479 = vbcast.lane.b32.xlu0 %v465_v24, 280 }
 0x123   : > { %547 = vbcast.lane.b32.xlu1 %v541_v32, 264  ;;  %543 = vbcast.lane.b32.xlu0 %v541_v32, 256 }
 0x127   : > { %498 = vbcast.lane.b32.xlu1 %v484_v26, 280  ;;  %532 = vbcast.lane.b32.xlu0 %v522_v30, 272 }
 0x12b   : > { %517 = vbcast.lane.b32.xlu1 %v503_v28, 280  ;;  %551 = vbcast.lane.b32.xlu0 %v541_v32, 272 }
 0x12f   : > { %555 = vbcast.lane.b32.xlu1 %v541_v32, 280  ;;  %536 = vbcast.lane.b32.xlu0 %v522_v30, 280 }
 0x133   : > { %642 = vperm.xlu0 %1272, %v624_v33  }
 0x165   : > { %v430_v38 = vpop.permute.xlu1 %429  ;;  %v411_v39 = vpop.permute.xlu0 %410 }
 0x166   : > { %v561_v40 = vadd.f32 %v430_v38, %v1613_v37  ;;  %v557_v41 = vadd.f32 %v411_v39, %v1613_v37 }
 0x168   : > { %1274 = vtanh.f32 %v561_v40 }
 0x169   : > { %1276 = vtanh.f32 %v557_v41  ;;  %v434_v43 = vpop.permute.xlu1 %433  ;;  %v415_v44 = vpop.permute.xlu0 %414 }
 0x16a   : > { %v562_v45 = vadd.f32 %v434_v43, %v1618_v42  ;;  %v558_v46 = vadd.f32 %v415_v44, %v1618_v42 }
 0x16c   : > { %1278 = vtanh.f32 %v562_v45 }
 0x16d   : > { %1280 = vtanh.f32 %v558_v46  ;;  %v453_v47 = vpop.permute.xlu1 %452  ;;  %v449_v48 = vpop.permute.xlu0 %448 }
 0x16e   : > { %v566_v49 = vadd.f32 %v453_v47, %v1618_v42  ;;  %v565_v50 = vadd.f32 %v449_v48, %v1613_v37 }
 0x170   : > { %1282 = vtanh.f32 %v566_v49 }
 0x171   : > { %1284 = vtanh.f32 %v565_v50  ;;  %v438_v52 = vpop.permute.xlu1 %437  ;;  %v419_v53 = vpop.permute.xlu0 %418 }
 0x172   : > { %v1275_v54 = vpop.eup %1274  ;;  %v563_v55 = vadd.f32 %v438_v52, %v1625_v51  ;;  %v559_v56 = vadd.f32 %v419_v53, %v1625_v51 }
 0x173   : > { %v1277_v57 = vpop.eup %1276  ;;  %v649_v58 = vmul.f32 %v1275_v54, %v1605_v36 }
 0x174   : > { %v645_v59 = vmul.f32 %v1277_v57, %v1605_v36  ;;  %1286 = vtanh.f32 %v563_v55 }
 0x175   : > { %1288 = vtanh.f32 %v559_v56  ;;  %v472_v60 = vpop.permute.xlu1 %471  ;;  %v468_v61 = vpop.permute.xlu0 %467  ;;  %v691_v4 = vsel %vm677_vm2, %v649_v58, 0.0 }
 0x176   : > { %v1279_v62 = vpop.eup %1278  ;;  %v570_v63 = vadd.f32 %v472_v60, %v1618_v42  ;;  %v569_v0 = vadd.f32 %v468_v61, %v1613_v37  ;;  %v678_v5 = vsel %vm677_vm2, %v645_v59, 0.0 }
 0x177   : > { %v1281_v1 = vpop.eup %1280  ;;  %v650_v2 = vmul.f32 %v1279_v62, %v1600_v34 }
 0x178   : > { %v646_v3 = vmul.f32 %v1281_v1, %v1600_v34  ;;  %1290 = vtanh.f32 %v570_v63 }
 0x179   : > { %v692_v6 = vsel %vm677_vm2, %v650_v2, 0.0  ;;  %1292 = vtanh.f32 %v569_v0  ;;  %v487_v7 = vpop.permute.xlu1 %486  ;;  %v457_v8 = vpop.permute.xlu0 %456 }
 0x17a   : > { %v1283_v9 = vpop.eup %1282  ;;  %v693_v10 = vadd.f32 %v692_v6, %v691_v4  ;;  %v679_v11 = vsel %vm677_vm2, %v646_v3, 0.0  ;;  %v573_v12 = vadd.f32 %v487_v7, %v1613_v37  ;;  %v567_v13 = vadd.f32 %v457_v8, %v1625_v51 }
 0x17b   : > { %v1285_v14 = vpop.eup %1284  ;;  %v680_v15 = vadd.f32 %v679_v11, %v678_v5  ;;  %v654_v16 = vmul.f32 %v1283_v9, %v1600_v34 }
 0x17c   : > { %v653_v17 = vmul.f32 %v1285_v14, %v1605_v36  ;;  %1294 = vtanh.f32 %v573_v12 }
 0x17d   : > { %v705_v18 = vsel %vm677_vm2, %v654_v16, 0.0  ;;  %1296 = vtanh.f32 %v567_v13  ;;  %v1644_v19 = vpop.permute.xlu1 %422  ;;  %v491_v20 = vpop.permute.xlu0 %490 }
 0x17e   : > { %v1287_v21 = vpop.eup %1286  ;;  %v704_v22 = vsel %vm677_vm2, %v653_v17, 0.0  ;;  %v574_v23 = vadd.f32 %v491_v20, %v1618_v42 }
 0x17f   : > { %v1289_v24 = vpop.eup %1288  ;;  %v706_v25 = vadd.f32 %v705_v18, %v704_v22  ;;  %v651_v26 = vmul.f32 %v1287_v21, %v1603_v35 }
 0x180   : > { %v647_v27 = vmul.f32 %v1289_v24, %v1603_v35  ;;  %1298 = vtanh.f32 %v574_v23 }
 0x181   : > { %v694_v28 = vsel %vm677_vm2, %v651_v26, 0.0  ;;  %v476_v29 = vpop.permute.xlu1 %475  ;;  %v1651_v30 = vpop.permute.xlu0 %441 }
 0x182   : > { %v1291_v31 = vpop.eup %1290  ;;  %v1653_v32 = vadd.f32 %v694_v28, %v693_v10  ;;  %v681_v33 = vsel %vm677_vm2, %v647_v27, 0.0  ;;  %v571_v38 = vadd.f32 %v476_v29, %v1625_v51 }
 0x183   : > { %v1293_v39 = vpop.eup %1292  ;;  %v1657_v40 = vadd.f32 %v681_v33, %v680_v15  ;;  %v658_v41 = vmul.f32 %v1291_v31, %v1600_v34 }
 0x184   : > { %v657_v43 = vmul.f32 %v1293_v39, %v1605_v36  ;;  %1300 = vtanh.f32 %v571_v38 }
 0x185   : > { %v718_v44 = vsel %vm677_vm2, %v658_v41, 0.0  ;;  %v510_v45 = vpop.permute.xlu1 %509  ;;  %v506_v46 = vpop.permute.xlu0 %505  ;;  %v404_v41 = vld [vmem:[%s1610_s27 + $0x18] sm:$0xff]  ;;  %s1472_s27 = smov [#allocation4]  }
 0x186   : > { %v1295_v47 = vpop.eup %1294  ;;  %v717_v48 = vsel %vm677_vm2, %v657_v43, 0.0  ;;  %v578_v49 = vadd.f32 %v510_v45, %v1618_v42  ;;  %v577_v50 = vadd.f32 %v506_v46, %v1613_v37  ;;  %s1360_s28 = sshll.u32 %s1472_s27, 4  ;;  %s1361_s28 = int_to_ptr.vmem [resolvable:$false] %s1360_s28 }
 0x187   : > { %v1297_v52 = vpop.eup %1296  ;;  %v719_v53 = vadd.f32 %v718_v44, %v717_v48  ;;  %v661_v54 = vmul.f32 %v1295_v47, %v1605_v36  ;;  %v560_v47 = vadd.f32 %v1644_v19, %v404_v41  ;;  %s1362_s8 = scalar_lea.vmem %s1361_s28, 256  ;;  %p1363_p1 = scmp.lt.s32.totalorder %s1032_s18, %s1361_s28 }
 0x188   : > { %v655_v55 = vmul.f32 %v1297_v52, %v1603_v35  ;;  %1302 = vtanh.f32 %v578_v49  ;;  %p1364_p2 = scmp.lt.s32.totalorder %s1362_s8, %s1356_s20 }
 0x189   : > { %1304 = vtanh.f32 %v577_v50  ;;  %v495_v56 = vpop.permute.xlu1 %494  ;;  %v461_v57 = vpop.permute.xlu0 %460  ;;  %v730_v2 = vsel %vm677_vm2, %v661_v54, 0.0  ;;  %v564_v50 = vadd.f32 %v1651_v30, %v404_v41 }
 0x18a   : > { %v707_v58 = vsel %vm677_vm2, %v655_v55, 0.0  ;;  %v575_v59 = vadd.f32 %v495_v56, %v1625_v51  ;;  %v1299_v60 = vpop.eup %1298  ;;  %v568_v54 = vadd.f32 %v461_v57, %v404_v41  ;;  %p1365_p3 = por %p1364_p2, %p1363_p1 }
 0x18b   : > { %v1669_v61 = vadd.f32 %v707_v58, %v706_v25  ;;  %v662_v62 = vmul.f32 %v1299_v60, %v1600_v34 }
 0x18c   : > { %1306 = vtanh.f32 %v575_v59  ;;  %p1366_p5 = pnand %p1365_p3, %p1359_p0 }
 0x18d   : > { %v529_v63 = vpop.permute.xlu1 %528  ;;  %v525_v0 = vpop.permute.xlu0 %524  ;;  %v731_v3 = vsel %vm677_vm2, %v662_v62, 0.0 }
 0x18e   : > { %v1301_v1 = vpop.eup %1300  ;;  %v582_v4 = vadd.f32 %v529_v63, %v1618_v42  ;;  %v581_v5 = vadd.f32 %v525_v0, %v1613_v37  ;;  %v732_v6 = vadd.f32 %v731_v3, %v730_v2 }
 0x18f   : > { %v659_v7 = vmul.f32 %v1301_v1, %v1603_v35 }
 0x190   : > { %1308 = vtanh.f32 %v582_v4 }
 0x191   : > { %v720_v8 = vsel %vm677_vm2, %v659_v7, 0.0  ;;  %1310 = vtanh.f32 %v581_v5  ;;  %v514_v9 = vpop.permute.xlu1 %513  ;;  %v480_v10 = vpop.permute.xlu0 %479 }
 0x192   : > { %v1303_v11 = vpop.eup %1302  ;;  %v1678_v12 = vadd.f32 %v720_v8, %v719_v53  ;;  %v579_v13 = vadd.f32 %v514_v9, %v1625_v51  ;;  %v572_v56 = vadd.f32 %v480_v10, %v404_v41 }
 0x193   : > { %v1305_v14 = vpop.eup %1304  ;;  %v666_v15 = vmul.f32 %v1303_v11, %v1600_v34 }
 0x194   : > { %v665_v16 = vmul.f32 %v1305_v14, %v1605_v36  ;;  %1312 = vtanh.f32 %v579_v13 }
 0x195   : > { %v744_v17 = vsel %vm677_vm2, %v666_v15, 0.0  ;;  %v548_v18 = vpop.permute.xlu1 %547  ;;  %v544_v20 = vpop.permute.xlu0 %543 }
 0x196   : > { %v1307_v21 = vpop.eup %1306  ;;  %v743_v22 = vsel %vm677_vm2, %v665_v16, 0.0  ;;  %v586_v23 = vadd.f32 %v548_v18, %v1618_v42  ;;  %v585_v24 = vadd.f32 %v544_v20, %v1613_v37 }
 0x197   : > { %v745_v25 = vadd.f32 %v744_v17, %v743_v22  ;;  %v663_v26 = vmul.f32 %v1307_v21, %v1603_v35 }
 0x198   : > { %1314 = vtanh.f32 %v586_v23 }
 0x199   : > { %v733_v27 = vsel %vm677_vm2, %v663_v26, 0.0  ;;  %1316 = vtanh.f32 %v585_v24  ;;  %v499_v28 = vpop.permute.xlu1 %498  ;;  %v533_v29 = vpop.permute.xlu0 %532 }
 0x19a   : > { %v1309_v31 = vpop.eup %1308  ;;  %v1689_v33 = vadd.f32 %v733_v27, %v732_v6  ;;  %v583_v38 = vadd.f32 %v533_v29, %v1625_v51  ;;  %v576_v62 = vadd.f32 %v499_v28, %v404_v41 }
 0x19b   : > { %v1311_v39 = vpop.eup %1310  ;;  %v670_v42 = vmul.f32 %v1309_v31, %v1600_v34 }
 0x19c   : > { %v669_v37 = vmul.f32 %v1311_v39, %v1605_v36  ;;  %1318 = vtanh.f32 %v583_v38 }
 0x19d   : > { %v757_v43 = vsel %vm677_vm2, %v670_v42, 0.0  ;;  %v518_v44 = vpop.permute.xlu1 %517  ;;  %v552_v45 = vpop.permute.xlu0 %551 }
 0x19e   : > { %v1313_v46 = vpop.eup %1312  ;;  %v756_v48 = vsel %vm677_vm2, %v669_v37, 0.0  ;;  %v587_v49 = vadd.f32 %v552_v45, %v1625_v51  ;;  %v580_v0 = vadd.f32 %v518_v44, %v404_v41 }
 0x19f   : > { %v758_v52 = vadd.f32 %v757_v43, %v756_v48  ;;  %v667_v53 = vmul.f32 %v1313_v46, %v1603_v35 }
 0x1a0   : > { %1320 = vtanh.f32 %v587_v49 }
 0x1a1   : > { %v746_v55 = vsel %vm677_vm2, %v667_v53, 0.0  ;;  %v556_v58 = vpop.permute.xlu1 %555  ;;  %1322 = vtanh.f32 %v560_v47  ;;  %v537_v19 = vpop.permute.xlu0 %536 }
 0x1a2   : > { %v1315_v59 = vpop.eup %1314  ;;  %v747_v60 = vadd.f32 %v746_v55, %v745_v25  ;;  %1324 = vtanh.f32 %v564_v50  ;;  %v588_v1 = vadd.f32 %v556_v58, %v404_v41  ;;  %v584_v2 = vadd.f32 %v537_v19, %v404_v41 }
 0x1a3   : > { %v1317_v63 = vpop.eup %1316  ;;  %v674_v51 = vmul.f32 %v1315_v59, %v1600_v34  ;;  %1326 = vtanh.f32 %v568_v54 }
 0x1a4   : > { %v673_v30 = vmul.f32 %v1317_v63, %v1605_v36  ;;  %1328 = vtanh.f32 %v572_v56 }
 0x1a5   : > { %v770_v57 = vsel %vm677_vm2, %v674_v51, 0.0  ;;  %1330 = vtanh.f32 %v576_v62 }
 0x1a6   : > { %v769_v3 = vsel %vm677_vm2, %v673_v30, 0.0  ;;  %v1319_v4 = vpop.eup %1318  ;;  %1332 = vtanh.f32 %v580_v0 }
 0x1a7   : > { %v771_v5 = vadd.f32 %v770_v57, %v769_v3  ;;  %v671_v6 = vmul.f32 %v1319_v4, %v1603_v35  ;;  %1334 = vtanh.f32 %v588_v1 }
 0x1a8   : > { %1336 = vtanh.f32 %v584_v2 }
 0x1a9   : > { %v759_v34 = vsel %vm677_vm2, %v671_v6, 0.0 }
 0x1aa   : > { %v1321_v7 = vpop.eup %1320  ;;  %v760_v8 = vadd.f32 %v759_v34, %v758_v52 }
 0x1ab   : > { %v1323_v36 = vpop.eup %1322  ;;  %v675_v9 = vmul.f32 %v1321_v7, %v1603_v35 }
 0x1ac   : > { %v1325_v10 = vpop.eup %1324 }
 0x1ad   : > { %v1327_v11 = vpop.eup %1326  ;;  %v772_v13 = vsel %vm677_vm2, %v675_v9, 0.0 }
 0x1ae   : > { %v1329_v14 = vpop.eup %1328  ;;  %v773_v15 = vadd.f32 %v772_v13, %v771_v5 }
 0x1af   : > { %v1331_v16 = vpop.eup %1330 }
 0x1b0   : > { %v1333_v17 = vpop.eup %1332 }
 0x1b1   : > { %v1335_v18 = vpop.eup %1334 }
 0x1b2   : > { %v643_v20 = vpop.permute.xlu0 %642  ;;  %v1337_v21 = vpop.eup %1336 }
 0x1b3   : > { %v648_v22 = vmul.f32 %v1323_v36, %v643_v20  ;;  %v652_v23 = vmul.f32 %v1325_v10, %v643_v20  ;;  %v656_v24 = vmul.f32 %v1327_v11, %v643_v20  ;;  %v660_v25 = vmul.f32 %v1329_v14, %v643_v20 }
 0x1b4   : > { %v664_v26 = vmul.f32 %v1331_v16, %v643_v20  ;;  %v668_v27 = vmul.f32 %v1333_v17, %v643_v20  ;;  %v672_v28 = vmul.f32 %v1337_v21, %v643_v20  ;;  %v676_v29 = vmul.f32 %v1335_v18, %v643_v20 }
 0x1b5   : > { %v683_v35 = vsel %vm677_vm2, %v648_v22, 0.0  ;;  %v696_v31 = vsel %vm677_vm2, %v652_v23, 0.0  ;;  %v709_v38 = vsel %vm677_vm2, %v656_v24, 0.0  ;;  %v722_v39 = vsel %vm677_vm2, %v660_v25, 0.0 }
 0x1b6   : > { %v684_v41 = vadd.f32 %v683_v35, %v1657_v40  ;;  %v697_v42 = vadd.f32 %v696_v31, %v1653_v32  ;;  %v710_v37 = vadd.f32 %v709_v38, %v1669_v61  ;;  %v723_v43 = vadd.f32 %v722_v39, %v1678_v12 }
 0x1b7   : > { %v735_v44 = vsel %vm677_vm2, %v664_v26, 0.0  ;;  %v748_v45 = vsel %vm677_vm2, %v668_v27, 0.0  ;;  %v761_v46 = vsel %vm677_vm2, %v672_v28, 0.0  ;;  %v774_v47 = vsel %vm677_vm2, %v676_v29, 0.0 }
 0x1b8   : > { %v685_v48 = vrot.slane %v684_v41, 4  ;;  %v698_v49 = vrot.slane %v697_v42, 4  ;;  %v711_v50 = vrot.slane %v710_v37, 4  ;;  %v724_v52 = vrot.slane %v723_v43, 4 }
 0x1b9   : > { %v736_v40 = vadd.f32 %v735_v44, %v1689_v33  ;;  %v749_v53 = vadd.f32 %v748_v45, %v747_v60  ;;  %v762_v32 = vadd.f32 %v761_v46, %v760_v8  ;;  %v775_v54 = vadd.f32 %v774_v47, %v773_v15 }
 0x1ba   : > { %v686_v61 = vadd.f32 %v685_v48, %v684_v41  ;;  %v699_v12 = vadd.f32 %v698_v49, %v697_v42  ;;  %v712_v55 = vadd.f32 %v711_v50, %v710_v37  ;;  %v725_v56 = vadd.f32 %v724_v52, %v723_v43 }
 0x1bb   : > { %v737_v58 = vrot.slane %v736_v40, 4  ;;  %v750_v59 = vrot.slane %v749_v53, 4  ;;  %v763_v62 = vrot.slane %v762_v32, 4  ;;  %v776_v19 = vrot.slane %v775_v54, 4 }
 0x1bc   : > { %v687_v63 = vrot.slane %v686_v61, 2  ;;  %v700_v51 = vrot.slane %v699_v12, 2  ;;  %v713_v0 = vrot.slane %v712_v55, 2  ;;  %v726_v30 = vrot.slane %v725_v56, 2 }
 0x1bd   : > { %v738_v1 = vadd.f32 %v737_v58, %v736_v40  ;;  %v751_v57 = vadd.f32 %v750_v59, %v749_v53  ;;  %v764_v2 = vadd.f32 %v763_v62, %v762_v32  ;;  %v777_v33 = vadd.f32 %v776_v19, %v775_v54 }
 0x1be   : > { %v688_v60 = vadd.f32 %v687_v63, %v686_v61  ;;  %v701_v3 = vadd.f32 %v700_v51, %v699_v12  ;;  %v714_v4 = vadd.f32 %v713_v0, %v712_v55  ;;  %v727_v5 = vadd.f32 %v726_v30, %v725_v56 }
 0x1bf   : > { %v739_v6 = vrot.slane %v738_v1, 2  ;;  %v752_v34 = vrot.slane %v751_v57, 2  ;;  %v765_v7 = vrot.slane %v764_v2, 2  ;;  %v778_v8 = vrot.slane %v777_v33, 2 }
 0x1c0   : > { %v689_v36 = vrot.slane %v688_v60, 1  ;;  %v702_v9 = vrot.slane %v701_v3, 1  ;;  %v715_v10 = vrot.slane %v714_v4, 1  ;;  %v728_v11 = vrot.slane %v727_v5, 1 }
 0x1c1   : > { %v740_v13 = vadd.f32 %v739_v6, %v738_v1  ;;  %v753_v14 = vadd.f32 %v752_v34, %v751_v57  ;;  %v766_v15 = vadd.f32 %v765_v7, %v764_v2  ;;  %v779_v16 = vadd.f32 %v778_v8, %v777_v33 }
 0x1c2   : > { %v690_v17 = vadd.f32 %v689_v36, %v688_v60  ;;  %v703_v18 = vadd.f32 %v702_v9, %v701_v3  ;;  %v716_v20 = vadd.f32 %v715_v10, %v714_v4  ;;  %v729_v25 = vadd.f32 %v728_v11, %v727_v5 }
 0x1c3   : > { %v741_v21 = vrot.slane %v740_v13, 1  ;;  %v754_v22 = vrot.slane %v753_v14, 1  ;;  %v767_v23 = vrot.slane %v766_v15, 1  ;;  %v780_v26 = vrot.slane %v779_v16, 1 }
 0x1c4   : > { %v791_v24 = vsel %vm790_vm3, %v703_v18, %v690_v17 }
 0x1c5   : > { %v742_v27 = vadd.f32 %v741_v21, %v740_v13  ;;  %v793_v28 = vsel %vm792_vm4, %v716_v20, %v791_v24  ;;  %v755_v29 = vadd.f32 %v754_v22, %v753_v14  ;;  %v768_v31 = vadd.f32 %v767_v23, %v766_v15  ;;  %v923_v21 = vld [vmem:[%s321_s11] sm:$0xff] }
 0x1c6   : > { %v795_v35 = vsel %vm794_vm5, %v729_v25, %v793_v28  ;;  %v781_v39 = vadd.f32 %v780_v26, %v779_v16  ;;  %1198 = vmatpush3.msra.mxu1 %v923_v21 }
 0x1c7   : > { %v797_v38 = vsel %vm796_vm6, %v742_v27, %v795_v35 }
 0x1c8   : > { %v799_v41 = vsel %vm798_vm7, %v755_v29, %v797_v38 }
 0x1c9   : > { %v801_v42 = vsel %vm800_vm8, %v768_v31, %v799_v41 }
 0x1ca   : > { %v803_v37 = vsel %vm802_vm9, %v781_v39, %v801_v42 }
 0x1cb   : > { %v805_v43 = vsel %vm677_vm2, %v803_v37, -inf }
 0x1cc   : > { %806 = vmax.xlane.f32.xlu1 %v805_v43 }
 0x259   : > { %v807_v44 = vpop.xlane.xlu1 %806 }
 0x25a   : > { %v809_v45 = vrot.slane %v807_v44, 1  ;;  %v810_v46 = vrot.slane %v807_v44, 2  ;;  %v811_v47 = vrot.slane %v807_v44, 3  ;;  %v812_v48 = vrot.slane %v807_v44, 4 }
 0x25b   : > { %v813_v49 = vrot.slane %v807_v44, 5  ;;  %v814_v50 = vrot.slane %v807_v44, 6  ;;  %v815_v52 = vrot.slane %v807_v44, 7  ;;  %v824_v40 = vsub.f32 %v690_v17, %v807_v44 }
 0x25c   : > { %v825_v53 = vsub.f32 %v703_v18, %v809_v45  ;;  %v826_v32 = vsub.f32 %v716_v20, %v810_v46  ;;  %v827_v54 = vsub.f32 %v729_v25, %v811_v47  ;;  %v828_v61 = vsub.f32 %v742_v27, %v812_v48 }
 0x25d   : > { %v829_v12 = vsub.f32 %v755_v29, %v813_v49  ;;  %v830_v55 = vsub.f32 %v768_v31, %v814_v50  ;;  %v832_v56 = vmul.f32 1.442695, %v824_v40  ;;  %v831_v58 = vsub.f32 %v781_v39, %v815_v52 }
 0x25e   : > { %v834_v59 = vmul.f32 1.442695, %v825_v53  ;;  %v836_v62 = vmul.f32 1.442695, %v826_v32  ;;  %v838_v19 = vmul.f32 1.442695, %v827_v54 }
 0x25f   : > { %1338 = vpow2.f32 %v832_v56  ;;  %v840_v63 = vmul.f32 1.442695, %v828_v61  ;;  %v842_v51 = vmul.f32 1.442695, %v829_v12  ;;  %v844_v0 = vmul.f32 1.442695, %v830_v55 }
 0x260   : > { %1340 = vpow2.f32 %v834_v59  ;;  %v846_v30 = vmul.f32 1.442695, %v831_v58 }
 0x261   : > { %1342 = vpow2.f32 %v836_v62 }
 0x262   : > { %1344 = vpow2.f32 %v838_v19 }
 0x263   : > { %1346 = vpow2.f32 %v840_v63 }
 0x264   : > { %1348 = vpow2.f32 %v842_v51 }
 0x265   : > { %1350 = vpow2.f32 %v844_v0 }
 0x266   : > { %1352 = vpow2.f32 %v846_v30 }
 0x269   : > { %v1339_v1 = vpop.eup %1338 }
 0x26a   : > { %v1341_v57 = vpop.eup %1340 }
 0x26b   : > { %v1343_v2 = vpop.eup %1342  ;;  %v856_v33 = vrot.slane %v1341_v57, 7 }
 0x26c   : > { %v1345_v60 = vpop.eup %1344  ;;  %v858_v3 = vrot.slane %v1343_v2, 6 }
 0x26d   : > { %v1347_v4 = vpop.eup %1346  ;;  %v857_v5 = vsel %vm790_vm3, %v856_v33, %v1339_v1  ;;  %v860_v6 = vrot.slane %v1345_v60, 5 }
 0x26e   : > { %v1349_v34 = vpop.eup %1348  ;;  %v859_v7 = vsel %vm792_vm4, %v858_v3, %v857_v5  ;;  %v862_v8 = vrot.slane %v1347_v4, 4 }
 0x26f   : > { %v1351_v36 = vpop.eup %1350  ;;  %v861_v9 = vsel %vm794_vm5, %v860_v6, %v859_v7  ;;  %v864_v10 = vrot.slane %v1349_v34, 3 }
 0x270   : > { %v1353_v11 = vpop.eup %1352  ;;  %v863_v13 = vsel %vm796_vm6, %v862_v8, %v861_v9  ;;  %v866_v14 = vrot.slane %v1351_v36, 2 }
 0x271   : > { %v865_v15 = vsel %vm798_vm7, %v864_v10, %v863_v13  ;;  %v868_v16 = vrot.slane %v1353_v11, 1 }
 0x272   : > { %v867_v17 = vsel %vm800_vm8, %v866_v14, %v865_v15 }
 0x273   : > { %v869_v18 = vsel %vm802_vm9, %v868_v16, %v867_v17 }
 0x274   : > { %v871_v20 = vsel %vm677_vm2, %v869_v18, 0.0 }
 0x275   : > { %872 = vadd.xlane.f32.xlu0 %v871_v20 }
 0x302   : > { %v873_v22 = vpop.xlane.xlu0 %872 }
 0x303   : > { %1354 = vrcp.f32 %v873_v22 }
 0x30d   : > { %v1355_v23 = vpop.eup %1354 }
 0x30e   : > { %v876_v24 = vrot.slane %v1355_v23, 1  ;;  %v877_v25 = vrot.slane %v1355_v23, 2  ;;  %v878_v26 = vrot.slane %v1355_v23, 3  ;;  %v879_v27 = vrot.slane %v1355_v23, 4 }
 0x30f   : > { %v880_v28 = vrot.slane %v1355_v23, 5  ;;  %v881_v29 = vrot.slane %v1355_v23, 6  ;;  %v882_v35 = vrot.slane %v1355_v23, 7  ;;  %v891_v42 = vmul.f32 %v1355_v23, %v1339_v1 }
 0x310   : > { %v892_v31 = vmul.f32 %v1341_v57, %v876_v24  ;;  %v893_v38 = vmul.f32 %v1343_v2, %v877_v25  ;;  %v894_v39 = vmul.f32 %v1345_v60, %v878_v26  ;;  %v895_v41 = vmul.f32 %v1347_v4, %v879_v27 }
 0x311   : > { %v896_v37 = vmul.f32 %v1349_v34, %v880_v28  ;;  %v897_v45 = vmul.f32 %v1351_v36, %v881_v29  ;;  %v898_v46 = vmul.f32 %v1353_v11, %v882_v35 }
 0x312   : > { %v907_v43 = vrot.slane %v892_v31, 7  ;;  %v909_v44 = vrot.slane %v893_v38, 6  ;;  %v911_v48 = vrot.slane %v894_v39, 5  ;;  %v913_v50 = vrot.slane %v895_v41, 4 }
 0x313   : > { %v915_v40 = vrot.slane %v896_v37, 3  ;;  %v917_v32 = vrot.slane %v897_v45, 2  ;;  %v919_v61 = vrot.slane %v898_v46, 1 }
 0x314   : > { %v908_v47 = vsel %vm790_vm3, %v907_v43, %v891_v42 }
 0x315   : > { %v910_v49 = vsel %vm792_vm4, %v909_v44, %v908_v47 }
 0x316   : > { %v912_v52 = vsel %vm794_vm5, %v911_v48, %v910_v49 }
 0x317   : > { %v914_v53 = vsel %vm796_vm6, %v913_v50, %v912_v52 }
 0x318   : > { %v916_v54 = vsel %vm798_vm7, %v915_v40, %v914_v53 }
 0x319   : > { %v918_v12 = vsel %vm800_vm8, %v917_v32, %v916_v54 }
 0x31a   : > { %v920_v55 = vsel %vm802_vm9, %v919_v61, %v918_v12 }
 0x31b   : > { %1200 = vmatmul.mubr.msk.f32.vlgmr.msra.gmra.mrb[0].mxu1 %vm677_vm2, %v920_v55  ;;  %922 = vst.msk [vmem:[%s305_s13] sm:$0xff] %vm677_vm2, %v920_v55 }
 0x31c   : > { %1369 = shalt.err (!%p1366_p5)
}
 0x31d   : > { %s1370_s11 = scalar_lea.hbm %s1765_s17, 128  ;;  %s1374_s16 = scalar_lea.hbm %s1846_s6, 256 }
 0x31e   : > { %p1371_p6 = scmp.ne.s32.totalorder %s1765_s17, %s1370_s11  ;;  %p1375_p10 = scmp.lt.u32.totalorder %s1765_s17, %s1846_s6 }
 0x31f   : > { %p1376_p11 = scmp.lt.u32.totalorder %s1374_s16, %s1370_s11  ;;  %p1378_p13 = scmp.lt.u32.totalorder %s1370_s11, %s1765_s17 }
 0x320   : > { %p1372_p7 = pnand %p1371_p6, %p1549_p4 }
 0x321   : > { %p1377_p12 = por %p1376_p11, %p1375_p10 }
 0x322   : > { %p1373_p9 = pneg %p1372_p7 }
 0x323   : > { %p1379_p0 = por %p1378_p13, %p1377_p12 }
 0x325   : > { %p1380_p1 = pnand %p1379_p0, %p1373_p9 }
 0x327   : > { %1383 = shalt.err (!%p1380_p1)
}
 0x328   : > { %1209 = dma.vmem_to_hbm [thread:$0]  (%p1549_p4), %s1032_s18, 128, %s1765_s17, %s1003_s19  }
 0x329   : > { %s298_s20 = scalar_lea.vmem [#allocation2], %s1164_s12  ;;  %s1794_s11 = scalar_lea.hbm %s1845_s5, %s1174_s14 }
 0x32a   : > { %s1017_s8 = sshll.u32 %s298_s20, 4  ;;  %s998_s16 = scalar_lea.sflag [#allocation3], %s1745_s30  ;;  %s1787_s8 = int_to_ptr.vmem [resolvable:$true] %s1017_s8 }
 0x32b   : > { %s1384_s27 = scalar_lea.vmem %s1787_s8, 128  ;;  %s1473_s12 = smov [#allocation2]  }
 0x32c   : > { %p1385_p2 = scmp.ne.s32.totalorder %s1787_s8, %s1384_s27  ;;  %s1388_s17 = sshll.u32 %s1473_s12, 4  ;;  %s1389_s17 = int_to_ptr.vmem [resolvable:$false] %s1388_s17 }
 0x32d   : > { %s1390_s24 = scalar_lea.vmem %s1389_s17, 256  ;;  %p1391_p6 = scmp.lt.s32.totalorder %s1787_s8, %s1389_s17 }
 0x32e   : > { %p1386_p3 = pnand %p1385_p2, %p1549_p4  ;;  %p1392_p7 = scmp.lt.s32.totalorder %s1390_s24, %s1384_s27 }
 0x330   : > { %p1387_p5 = pneg %p1386_p3  ;;  %p1393_p9 = por %p1392_p7, %p1391_p6 }
 0x332   : > { %p1394_p10 = pnand %p1393_p9, %p1387_p5 }
 0x3ee   : > { %v992_v56 = vpop.f32.mrb[0].mxu1 }
 0x3ef   : > { %996 = vst [vmem:[%s298_s20] sm:$0xff] %v992_v56  ;;  %v1201_v58 = vpop.f32.mrb[1].mxu1 }
 0x3f0   : > { %1397 = shalt.err (!%p1394_p10)
}
 0x3f1   : > { %s1398_s30 = scalar_lea.hbm %s1794_s11, 128  ;;  %s1402_s19 = scalar_lea.hbm %s1845_s5, 256 }
 0x3f2   : > { %p1399_p11 = scmp.ne.s32.totalorder %s1794_s11, %s1398_s30  ;;  %p1403_p0 = scmp.lt.u32.totalorder %s1794_s11, %s1845_s5 }
 0x3f3   : > { %p1404_p1 = scmp.lt.u32.totalorder %s1402_s19, %s1398_s30  ;;  %p1406_p3 = scmp.lt.u32.totalorder %s1398_s30, %s1794_s11 }
 0x3f4   : > { %p1400_p12 = pnand %p1399_p11, %p1549_p4 }
 0x3f5   : > { %p1405_p2 = por %p1404_p1, %p1403_p0 }
 0x3f6   : > { %p1401_p13 = pneg %p1400_p12 }
 0x3f7   : > { %p1407_p5 = por %p1406_p3, %p1405_p2 }
 0x3f9   : > { %p1408_p6 = pnand %p1407_p5, %p1401_p13 }
 0x3fb   : > { %1411 = shalt.err (!%p1408_p6)
}
 0x3fc   : > { %1208 = dma.vmem_to_hbm [thread:$0]  (%p1549_p4), %s1787_s8, 128, %s1794_s11, %s998_s16  }
 0x3fd PF: > { %p1219_p7 = scmp.ge.s32.totalorder %s1466_s26, 2  ;;  %s1043_s13 = sand.u32 1, %s1446_s21  }
 0x3fe   : > { %s1044_s15 = scalar_lea.sflag [#allocation3], %s1043_s13 }
 0x3ff   : > { %p1213_p9 = pnand %p1219_p7, %p1556_p8 }
 0x401   : > { %1437 = dma.done.wait (!%p1213_p9), %s1044_s15, 128  }
 0x402   : > { %1439 = vsyncadd (!%p1213_p9), %s1044_s15, 4294967168  ;;  %s1053_s27 = scalar_lea.sflag [#allocation5], %s1043_s13 }
 0x403   : > { %1441 = dma.done.wait (!%p1213_p9), %s1053_s27, 128  }
 0x404   : > { %1443 = vsyncadd (!%p1213_p9), %s1053_s27, 4294967168  ;;  %s23_s26 = sadd.s32 1, %s1466_s26   ;;  %s1849_s21 = smov %s1450_s22 }
 0x405   : > { %p20_p10 = scmp.ge.s32.totalorder %s23_s26, 4   ;;  %s1850_s22 = smov %s1454_s23 }
 0x406   : > { %s1851_s23 = smov %s1562_s10  ;;  %s1852_s24 = smov %s1462_s25 }
 0x407   : > { %s1853_s25 = smov %s1855_s29  ;;  %22 = sbr.rel (!%p20_p10) target bundleno = 6 (0x6), region = 98 }
 0x40e   :  { %1058 = vsyncpa [#allocation3], 1 }
 0x40f   :  { %1060 = vsyncpa [#allocation3 + $0x1], 1 }
 0x410   :  { %1061 = vsyncpa [#allocation5], 1 }
 0x411   :  { %1063 = vsyncpa [#allocation5 + $0x1], 1 }

</bundles_post_ra>
